<compile_context>
chip_gen: v5e
topology: v5e:2x2
jax: 0.10.0
libtpu: 0.0.40
codegen_flags: <defaults>
</compile_context>

<pallas_src>
import numpy as np
import jax
import jax.numpy as jnp
from jax import lax
from jax.experimental import pallas as pl
from jax.experimental.pallas import tpu as pltpu

EPS = 1e-6
HIDDEN = 8  # alignment MLP: Linear(1,8) -> ReLU -> Linear(8,8) -> ReLU -> Linear(8,1) -> Sigmoid


def make_params():
    """Deterministic synthetic parameters (shapes from the module's __init__)."""
    rng = np.random.default_rng(0)
    w1 = rng.uniform(-0.5, 0.5, size=(HIDDEN,)).astype(np.float32)         # Linear(1,8).weight squeezed
    b1 = rng.uniform(-0.5, 0.5, size=(HIDDEN,)).astype(np.float32)
    W2 = rng.uniform(-0.5, 0.5, size=(HIDDEN, HIDDEN)).astype(np.float32)  # Linear(8,8).weight
    b2 = rng.uniform(-0.5, 0.5, size=(HIDDEN,)).astype(np.float32)
    w3 = rng.uniform(-0.5, 0.5, size=(HIDDEN,)).astype(np.float32)         # Linear(8,1).weight squeezed
    b3 = float(rng.uniform(-0.5, 0.5))
    alpha = float(rng.uniform(0.0, 1.0))                                   # nn.Parameter(torch.rand(1))
    return w1, b1, W2, b2, w3, b3, alpha


def make_kernel(params):
    w1_np, b1_np, W2_np, b2_np, w3_np, b3, alpha_p = params
    # Bake the tiny MLP weights in as Python scalars (closure constants).
    w1 = [float(x) for x in w1_np]
    b1 = [float(x) for x in b1_np]
    W2 = [[float(x) for x in row] for row in W2_np]
    b2 = [float(x) for x in b2_np]
    w3 = [float(x) for x in w3_np]

    def kernel(q_ref, k_ref, v_ref, mq_ref, mk_ref, o_ref):
        # Batch (TB) is on the lane axis everywhere.
        q = q_ref[...]    # (D, TB)   Poincare query
        k = k_ref[...]    # (N, D, TB) Poincare keys
        v = v_ref[...]    # (N, D, TB) Poincare values
        mq = mq_ref[...]  # (1, TB)   query mask
        mk = mk_ref[...]  # (N, TB)   key mask

        # ---- squared norms over the feature (sublane) axis -------------------------------
        q2 = jnp.sum(q * q, axis=0, keepdims=True)        # (1, TB)
        k2 = jnp.sum(k * k, axis=1)                       # (N, TB)
        v2 = jnp.sum(v * v, axis=1)                       # (N, TB)

        # ---- klein(): Poincare -> Klein (shared reciprocals hoisted) ----------------------
        q_kl = (2.0 / (1.0 + q2)) * q                     # (D, TB)
        v_kl = (2.0 / (1.0 + v2))[:, None, :] * v         # (N, D, TB)

        # ---- hyperboloid() lift from Poincare ---------------------------------------------
        inv_q = 1.0 / (1.0 - q2)                          # (1, TB)
        qh0 = (1.0 + q2) * inv_q                          # (1, TB)
        qhs = (2.0 * inv_q) * q                           # (D, TB)
        inv_k = 1.0 / (1.0 - k2)                          # (N, TB)
        kh0 = (1.0 + k2) * inv_k                          # (N, TB)
        khs = (2.0 * inv_k)[:, None, :] * k               # (N, D, TB)

        # ---- dist_h(): Lorentz distance, arccosh(q0*k0 - <qs, ks>) ------------------------
        inner = qh0 * kh0 - jnp.sum(qhs[None, :, :] * khs, axis=1)   # (N, TB)
        inner = jnp.maximum(inner, 1.0)
        d = jnp.log(inner + jnp.sqrt(inner * inner - 1.0))           # arccosh, (N, TB)

        # ---- alignment MLP 1->8->8->1 (hidden unrolled; every op lane-dense over (N,TB)) --
        h1 = [jnp.maximum(d * w1[i] + b1[i], 0.0) for i in range(HIDDEN)]
        s = jnp.full_like(d, b3)
        for j in range(HIDDEN):
            acc = h1[0] * W2[j][0]
            for i in range(1, HIDDEN):
                acc = acc + h1[i] * W2[j][i]
            s = s + jnp.maximum(acc + b2[j], 0.0) * w3[j]
        # 1/(sigmoid(s)+EPS) == (1+e)/(1+EPS*(1+e)) with e = exp(-s)  (exact rewrite)
        e = jnp.exp(-s)
        one_pe = 1.0 + e
        align = one_pe / (1.0 + EPS * one_pe)             # (N, TB)
        # TODO(synk): torch's `if v.isnan().any(): breakpoint()` debug hook has no kernel equivalent.
        alpha = jnp.exp(align) * mk                       # masked attention weights, (N, TB)

        # ---- einstein_midpoint(alpha, klein(v)) -------------------------------------------
        g_v = lax.rsqrt(1.0 - jnp.sum(v_kl * v_kl, axis=1))          # Lorentz factors, (N, TB)
        w = alpha * g_v                                              # (N, TB)
        num = jnp.sum(w[:, None, :] * v_kl, axis=0)                  # (D, TB)
        den = jnp.sum(w, axis=0, keepdims=True)                      # (1, TB)
        att = (num / den) * mq                                       # (D, TB)

        # ---- aggregation: weights [alpha_p, 1-alpha_p] over {klein(q), att} ----------------
        g_q = lax.rsqrt(1.0 - jnp.sum(q_kl * q_kl, axis=0, keepdims=True))   # (1, TB)
        g_a = lax.rsqrt(1.0 - jnp.sum(att * att, axis=0, keepdims=True))     # (1, TB)
        wq = alpha_p * g_q
        wa = (1.0 - alpha_p) * g_a
        m = (wq * q_kl + wa * att) / (wq + wa)                                # (D, TB) Klein point

        # ---- rev_klein(): Klein -> Poincare -------------------------------------------------
        m2 = jnp.sum(m * m, axis=0, keepdims=True)
        out = m / (1.0 + jnp.sqrt(jnp.maximum(1.0 - m2, 0.0)))
        o_ref[...] = out.astype(o_ref.dtype)

    return kernel


def _round_up(x, m):
    return ((x + m - 1) // m) * m


def hyperbolic_aggregation(q, k, v, mask_q, mask_k, params, tb=None):
    B, Nq, D = q.shape
    assert Nq == 1, "aggregation weight [[a, 1-a]] implies a single query point per batch"
    N = k.shape[1]
    dt = q.dtype

    # TB batch elements per grid step, batch on the lane axis (multiple of 128).
    if tb is None:
        tb = min(256, _round_up(B, 128))
    Bp = _round_up(B, tb)
    pad = Bp - B

    # Wrapper-side layout plumbing: put batch last (lane axis).
    qT = jnp.transpose(q.reshape(B, D))                       # (D, B)
    kT = jnp.transpose(k, (1, 2, 0))                          # (N, D, B)
    vT = jnp.transpose(v, (1, 2, 0))                          # (N, D, B)
    mqT = jnp.transpose(mask_q.reshape(B, 1).astype(dt))      # (1, B)
    mkT = jnp.transpose(mask_k.reshape(B, N).astype(dt))      # (N, B)
    if pad:
        qT = jnp.pad(qT, ((0, 0), (0, pad)))
        kT = jnp.pad(kT, ((0, 0), (0, 0), (0, pad)))
        vT = jnp.pad(vT, ((0, 0), (0, 0), (0, pad)))
        # Padded masks = 1 so padded lanes stay finite (zero points -> zero output; discarded).
        mqT = jnp.pad(mqT, ((0, 0), (0, pad)), constant_values=1.0)
        mkT = jnp.pad(mkT, ((0, 0), (0, pad)), constant_values=1.0)

    out = pl.pallas_call(
        make_kernel(params),
        out_shape=jax.ShapeDtypeStruct((D, Bp), dt),
        grid_spec=pltpu.PrefetchScalarGridSpec(
            num_scalar_prefetch=0,
            grid=(Bp // tb,),
            in_specs=[
                pl.BlockSpec((D, tb), lambda b: (0, b)),        # q^T
                pl.BlockSpec((N, D, tb), lambda b: (0, 0, b)),  # k^T
                pl.BlockSpec((N, D, tb), lambda b: (0, 0, b)),  # v^T
                pl.BlockSpec((1, tb), lambda b: (0, b)),        # mask_q^T
                pl.BlockSpec((N, tb), lambda b: (0, b)),        # mask_k^T
            ],
            out_specs=pl.BlockSpec((D, tb), lambda b: (0, b)),
        ),
        compiler_params=pltpu.CompilerParams(dimension_semantics=("parallel",)),
    )(qT, kT, vT, mqT, mkT)

    return jnp.transpose(out[:, :B]).reshape(B, 1, D)


def reference(q, k, v, mask_q, mask_k, params):
    """Pure-JAX reference matching the PyTorch forward semantics."""
    w1, b1, W2, b2, w3, b3, a = params

    def sqn(x):
        return jnp.sum(x * x, axis=-1, keepdims=True)

    def klein(x):
        return 2.0 * x / (1.0 + sqn(x))

    def hyperboloid(x):
        n = sqn(x)
        return (1.0 + n) / (1.0 - n), 2.0 * x / (1.0 - n)

    q0, qs = hyperboloid(q)                      # (B,1,1), (B,1,D)
    k0, ks = hyperboloid(k)                      # (B,N,1), (B,N,D)
    inner = q0 * jnp.swapaxes(k0, -1, -2) - jnp.einsum('bqd,bkd->bqk', qs, ks)
    inner = jnp.maximum(inner, 1.0)
    d = jnp.log(inner + jnp.sqrt(inner * inner - 1.0))      # (B,1,N)

    x = d[..., None]                                         # (B,1,N,1)
    h = jax.nn.relu(x * w1 + b1)
    h = jax.nn.relu(h @ W2.T + b2)
    s = h @ w3 + b3                                          # (B,1,N)
    align = 1.0 / (jax.nn.sigmoid(s) + EPS)
    alpha = jnp.exp(align) * mask_k[:, None, :]

    vk = klein(v)
    gv = 1.0 / jnp.sqrt(1.0 - sqn(vk))                       # (B,N,1)
    att = jnp.einsum('bqk,bkd->bqd', alpha, gv * vk) / jnp.einsum('bqk,bkd->bqd', alpha, gv)
    att = att * mask_q[:, :, None]

    agg = jnp.concatenate([klein(q), att], axis=-2)          # (B,2,D)
    ga = 1.0 / jnp.sqrt(1.0 - sqn(agg))                      # (B,2,1)
    weight = jnp.array([[a, 1.0 - a]], dtype=q.dtype)        # (1,2)
    m = (jnp.einsum('qk,bkd->bqd', weight, ga * agg) /
         jnp.einsum('qk,bkd->bqd', weight, ga))
    return m / (1.0 + jnp.sqrt(jnp.maximum(1.0 - sqn(m), 0.0)))


if __name__ == "__main__":
    B, N, D = 2, 8, 16

    def sample_ball(key, shape, max_r=0.7):
        kd, kr = jax.random.split(key)
        direction = jax.random.normal(kd, shape, jnp.float32)
        direction = direction / (jnp.linalg.norm(direction, axis=-1, keepdims=True) + 1e-6)
        radius = jax.random.uniform(kr, shape[:-1] + (1,), jnp.float32, 0.05, max_r)
        return direction * radius

    key = jax.random.PRNGKey(0)
    kq, kk, kv = jax.random.split(key, 3)
    q = sample_ball(kq, (B, 1, D))   # Poincare-ball query points
    k = sample_ball(kk, (B, N, D))   # Poincare-ball key points
    v = sample_ball(kv, (B, N, D))   # Poincare-ball value points
    mask_q = jnp.ones((B, 1), jnp.float32)
    mask_k = jnp.ones((B, N), jnp.float32)

    params = make_params()

    out = hyperbolic_aggregation(q, k, v, mask_q, mask_k, params)
    out = jax.block_until_ready(out)

    ref = reference(q, k, v, mask_q, mask_k, params)
    assert out.shape == (B, 1, D)
    assert bool(jnp.all(jnp.isfinite(out)))
    np.testing.assert_allclose(np.asarray(out), np.asarray(ref), rtol=2e-3, atol=2e-5)

    print("KERNEL_OK")
</pallas_src>

<mosaic_0001>
module attributes {stable_mosaic.version = 11 : i64} {
  func.func @kernel(%arg0: i32, %arg1: memref<16x128xf32, #tpu.memory_space<vmem>>, %arg2: memref<8x16x128xf32, #tpu.memory_space<vmem>>, %arg3: memref<8x16x128xf32, #tpu.memory_space<vmem>>, %arg4: memref<1x128xf32, #tpu.memory_space<vmem>>, %arg5: memref<8x128xf32, #tpu.memory_space<vmem>>, %arg6: memref<16x128xf32, #tpu.memory_space<vmem>>) attributes {dimension_semantics = [#tpu.dimension_semantics<parallel>], iteration_bounds = array<i64: 1>, scalar_prefetch = 0 : i64, scratch_operands = 0 : i64, tpu.core_type = #tpu.core_type<tc>, window_params = [{transform_indices = @transform_0, window_bounds = array<i64: 16, 128>}, {transform_indices = @transform_1, window_bounds = array<i64: 8, 16, 128>}, {transform_indices = @transform_2, window_bounds = array<i64: 8, 16, 128>}, {transform_indices = @transform_3, window_bounds = array<i64: 1, 128>}, {transform_indices = @transform_4, window_bounds = array<i64: 8, 128>}, {transform_indices = @transform_5, window_bounds = array<i64: 16, 128>}]} {
    %c0 = arith.constant 0 : index
    %c0_0 = arith.constant 0 : index
    %0 = vector.load %arg1[%c0, %c0_0] : memref<16x128xf32, #tpu.memory_space<vmem>>, vector<16x128xf32>
    %c0_1 = arith.constant 0 : index
    %c0_2 = arith.constant 0 : index
    %c0_3 = arith.constant 0 : index
    %1 = vector.load %arg2[%c0_1, %c0_2, %c0_3] : memref<8x16x128xf32, #tpu.memory_space<vmem>>, vector<8x16x128xf32>
    %c0_4 = arith.constant 0 : index
    %c0_5 = arith.constant 0 : index
    %c0_6 = arith.constant 0 : index
    %2 = vector.load %arg3[%c0_4, %c0_5, %c0_6] : memref<8x16x128xf32, #tpu.memory_space<vmem>>, vector<8x16x128xf32>
    %c0_7 = arith.constant 0 : index
    %c0_8 = arith.constant 0 : index
    %3 = vector.load %arg4[%c0_7, %c0_8] : memref<1x128xf32, #tpu.memory_space<vmem>>, vector<1x128xf32>
    %c0_9 = arith.constant 0 : index
    %c0_10 = arith.constant 0 : index
    %4 = vector.load %arg5[%c0_9, %c0_10] : memref<8x128xf32, #tpu.memory_space<vmem>>, vector<8x128xf32>
    %5 = arith.mulf %0, %0 : vector<16x128xf32>
    %cst = arith.constant dense<0.000000e+00> : vector<128xf32>
    %6 = vector.multi_reduction <add>, %5, %cst [0] : vector<16x128xf32> to vector<128xf32>
    %7 = vector.shape_cast %6 : vector<128xf32> to vector<1x128xf32>
    %8 = arith.mulf %1, %1 : vector<8x16x128xf32>
    %cst_11 = arith.constant dense<0.000000e+00> : vector<8x128xf32>
    %9 = vector.multi_reduction <add>, %8, %cst_11 [1] : vector<8x16x128xf32> to vector<8x128xf32>
    %10 = arith.mulf %2, %2 : vector<8x16x128xf32>
    %cst_12 = arith.constant dense<0.000000e+00> : vector<8x128xf32>
    %11 = vector.multi_reduction <add>, %10, %cst_12 [1] : vector<8x16x128xf32> to vector<8x128xf32>
    %cst_13 = arith.constant 1.000000e+00 : f32
    %12 = vector.broadcast %cst_13 : f32 to vector<1x128xf32>
    %13 = arith.addf %12, %7 : vector<1x128xf32>
    %cst_14 = arith.constant 2.000000e+00 : f32
    %14 = vector.broadcast %cst_14 : f32 to vector<1x128xf32>
    %15 = arith.divf %14, %13 : vector<1x128xf32>
    %16 = vector.broadcast %15 : vector<1x128xf32> to vector<16x128xf32>
    %17 = arith.mulf %16, %0 : vector<16x128xf32>
    %cst_15 = arith.constant 1.000000e+00 : f32
    %18 = vector.broadcast %cst_15 : f32 to vector<8x128xf32>
    %19 = arith.addf %18, %11 : vector<8x128xf32>
    %cst_16 = arith.constant 2.000000e+00 : f32
    %20 = vector.broadcast %cst_16 : f32 to vector<8x128xf32>
    %21 = arith.divf %20, %19 : vector<8x128xf32>
    %22 = vector.shape_cast %21 : vector<8x128xf32> to vector<8x1x128xf32>
    %23 = vector.broadcast %22 : vector<8x1x128xf32> to vector<8x16x128xf32>
    %24 = arith.mulf %23, %2 : vector<8x16x128xf32>
    %cst_17 = arith.constant 1.000000e+00 : f32
    %25 = vector.broadcast %cst_17 : f32 to vector<1x128xf32>
    %26 = arith.subf %25, %7 : vector<1x128xf32>
    %cst_18 = arith.constant 1.000000e+00 : f32
    %27 = vector.broadcast %cst_18 : f32 to vector<1x128xf32>
    %28 = arith.divf %27, %26 : vector<1x128xf32>
    %cst_19 = arith.constant 1.000000e+00 : f32
    %29 = vector.broadcast %cst_19 : f32 to vector<1x128xf32>
    %30 = arith.addf %29, %7 : vector<1x128xf32>
    %31 = arith.mulf %30, %28 : vector<1x128xf32>
    %cst_20 = arith.constant 2.000000e+00 : f32
    %32 = vector.broadcast %cst_20 : f32 to vector<1x128xf32>
    %33 = arith.mulf %32, %28 : vector<1x128xf32>
    %34 = vector.broadcast %33 : vector<1x128xf32> to vector<16x128xf32>
    %35 = arith.mulf %34, %0 : vector<16x128xf32>
    %cst_21 = arith.constant 1.000000e+00 : f32
    %36 = vector.broadcast %cst_21 : f32 to vector<8x128xf32>
    %37 = arith.subf %36, %9 : vector<8x128xf32>
    %cst_22 = arith.constant 1.000000e+00 : f32
    %38 = vector.broadcast %cst_22 : f32 to vector<8x128xf32>
    %39 = arith.divf %38, %37 : vector<8x128xf32>
    %cst_23 = arith.constant 1.000000e+00 : f32
    %40 = vector.broadcast %cst_23 : f32 to vector<8x128xf32>
    %41 = arith.addf %40, %9 : vector<8x128xf32>
    %42 = arith.mulf %41, %39 : vector<8x128xf32>
    %cst_24 = arith.constant 2.000000e+00 : f32
    %43 = vector.broadcast %cst_24 : f32 to vector<8x128xf32>
    %44 = arith.mulf %43, %39 : vector<8x128xf32>
    %45 = vector.shape_cast %44 : vector<8x128xf32> to vector<8x1x128xf32>
    %46 = vector.broadcast %45 : vector<8x1x128xf32> to vector<8x16x128xf32>
    %47 = arith.mulf %46, %1 : vector<8x16x128xf32>
    %48 = vector.broadcast %31 : vector<1x128xf32> to vector<8x128xf32>
    %49 = arith.mulf %48, %42 : vector<8x128xf32>
    %50 = vector.shape_cast %35 : vector<16x128xf32> to vector<1x16x128xf32>
    %51 = vector.broadcast %50 : vector<1x16x128xf32> to vector<8x16x128xf32>
    %52 = arith.mulf %51, %47 : vector<8x16x128xf32>
    %cst_25 = arith.constant dense<0.000000e+00> : vector<8x128xf32>
    %53 = vector.multi_reduction <add>, %52, %cst_25 [1] : vector<8x16x128xf32> to vector<8x128xf32>
    %54 = arith.subf %49, %53 : vector<8x128xf32>
    %cst_26 = arith.constant 1.000000e+00 : f32
    %55 = vector.broadcast %cst_26 : f32 to vector<8x128xf32>
    %56 = arith.maximumf %54, %55 : vector<8x128xf32>
    %57 = arith.mulf %56, %56 : vector<8x128xf32>
    %cst_27 = arith.constant 1.000000e+00 : f32
    %58 = vector.broadcast %cst_27 : f32 to vector<8x128xf32>
    %59 = arith.subf %57, %58 : vector<8x128xf32>
    %60 = math.sqrt %59 : vector<8x128xf32>
    %61 = arith.addf %56, %60 : vector<8x128xf32>
    %62 = math.log %61 : vector<8x128xf32>
    %cst_28 = arith.constant 0.136961684 : f32
    %63 = vector.broadcast %cst_28 : f32 to vector<8x128xf32>
    %64 = arith.mulf %62, %63 : vector<8x128xf32>
    %cst_29 = arith.constant 0.0436249897 : f32
    %65 = vector.broadcast %cst_29 : f32 to vector<8x128xf32>
    %66 = arith.addf %64, %65 : vector<8x128xf32>
    %cst_30 = arith.constant 0.000000e+00 : f32
    %67 = vector.broadcast %cst_30 : f32 to vector<8x128xf32>
    %68 = arith.maximumf %66, %67 : vector<8x128xf32>
    %cst_31 = arith.constant -0.230213284 : f32
    %69 = vector.broadcast %cst_31 : f32 to vector<8x128xf32>
    %70 = arith.mulf %62, %69 : vector<8x128xf32>
    %cst_32 = arith.constant 0.435072422 : f32
    %71 = vector.broadcast %cst_32 : f32 to vector<8x128xf32>
    %72 = arith.addf %70, %71 : vector<8x128xf32>
    %cst_33 = arith.constant 0.000000e+00 : f32
    %73 = vector.broadcast %cst_33 : f32 to vector<8x128xf32>
    %74 = arith.maximumf %72, %73 : vector<8x128xf32>
    %cst_34 = arith.constant -0.459026486 : f32
    %75 = vector.broadcast %cst_34 : f32 to vector<8x128xf32>
    %76 = arith.mulf %62, %75 : vector<8x128xf32>
    %cst_35 = arith.constant 0.315853566 : f32
    %77 = vector.broadcast %cst_35 : f32 to vector<8x128xf32>
    %78 = arith.addf %76, %77 : vector<8x128xf32>
    %cst_36 = arith.constant 0.000000e+00 : f32
    %79 = vector.broadcast %cst_36 : f32 to vector<8x128xf32>
    %80 = arith.maximumf %78, %79 : vector<8x128xf32>
    %cst_37 = arith.constant -0.483472377 : f32
    %81 = vector.broadcast %cst_37 : f32 to vector<8x128xf32>
    %82 = arith.mulf %62, %81 : vector<8x128xf32>
    %cst_38 = arith.constant -0.497261494 : f32
    %83 = vector.broadcast %cst_38 : f32 to vector<8x128xf32>
    %84 = arith.addf %82, %83 : vector<8x128xf32>
    %cst_39 = arith.constant 0.000000e+00 : f32
    %85 = vector.broadcast %cst_39 : f32 to vector<8x128xf32>
    %86 = arith.maximumf %84, %85 : vector<8x128xf32>
    %cst_40 = arith.constant 0.313270241 : f32
    %87 = vector.broadcast %cst_40 : f32 to vector<8x128xf32>
    %88 = arith.mulf %62, %87 : vector<8x128xf32>
    %cst_41 = arith.constant 0.357404262 : f32
    %89 = vector.broadcast %cst_41 : f32 to vector<8x128xf32>
    %90 = arith.addf %88, %89 : vector<8x128xf32>
    %cst_42 = arith.constant 0.000000e+00 : f32
    %91 = vector.broadcast %cst_42 : f32 to vector<8x128xf32>
    %92 = arith.maximumf %90, %91 : vector<8x128xf32>
    %cst_43 = arith.constant 0.412755579 : f32
    %93 = vector.broadcast %cst_43 : f32 to vector<8x128xf32>
    %94 = arith.mulf %62, %93 : vector<8x128xf32>
    %cst_44 = arith.constant -0.466414422 : f32
    %95 = vector.broadcast %cst_44 : f32 to vector<8x128xf32>
    %96 = arith.addf %94, %95 : vector<8x128xf32>
    %cst_45 = arith.constant 0.000000e+00 : f32
    %97 = vector.broadcast %cst_45 : f32 to vector<8x128xf32>
    %98 = arith.maximumf %96, %97 : vector<8x128xf32>
    %cst_46 = arith.constant 0.106635779 : f32
    %99 = vector.broadcast %cst_46 : f32 to vector<8x128xf32>
    %100 = arith.mulf %62, %99 : vector<8x128xf32>
    %cst_47 = arith.constant 0.229655445 : f32
    %101 = vector.broadcast %cst_47 : f32 to vector<8x128xf32>
    %102 = arith.addf %100, %101 : vector<8x128xf32>
    %cst_48 = arith.constant 0.000000e+00 : f32
    %103 = vector.broadcast %cst_48 : f32 to vector<8x128xf32>
    %104 = arith.maximumf %102, %103 : vector<8x128xf32>
    %cst_49 = arith.constant 0.229496554 : f32
    %105 = vector.broadcast %cst_49 : f32 to vector<8x128xf32>
    %106 = arith.mulf %62, %105 : vector<8x128xf32>
    %cst_50 = arith.constant -0.324344367 : f32
    %107 = vector.broadcast %cst_50 : f32 to vector<8x128xf32>
    %108 = arith.addf %106, %107 : vector<8x128xf32>
    %cst_51 = arith.constant 0.000000e+00 : f32
    %109 = vector.broadcast %cst_51 : f32 to vector<8x128xf32>
    %110 = arith.maximumf %108, %109 : vector<8x128xf32>
    %cst_52 = arith.constant -3.512360e-01 : f32
    %111 = vector.broadcast %cst_52 : f32 to vector<8x128xf32>
    %cst_53 = arith.constant 0.363178909 : f32
    %112 = vector.broadcast %cst_53 : f32 to vector<8x128xf32>
    %113 = arith.mulf %68, %112 : vector<8x128xf32>
    %cst_54 = arith.constant 0.0414612219 : f32
    %114 = vector.broadcast %cst_54 : f32 to vector<8x128xf32>
    %115 = arith.mulf %74, %114 : vector<8x128xf32>
    %116 = arith.addf %113, %115 : vector<8x128xf32>
    %cst_55 = arith.constant -0.200288102 : f32
    %117 = vector.broadcast %cst_55 : f32 to vector<8x128xf32>
    %118 = arith.mulf %80, %117 : vector<8x128xf32>
    %119 = arith.addf %116, %118 : vector<8x128xf32>
    %cst_56 = arith.constant -0.0773127824 : f32
    %120 = vector.broadcast %cst_56 : f32 to vector<8x128xf32>
    %121 = arith.mulf %86, %120 : vector<8x128xf32>
    %122 = arith.addf %119, %121 : vector<8x128xf32>
    %cst_57 = arith.constant -0.471680343 : f32
    %123 = vector.broadcast %cst_57 : f32 to vector<8x128xf32>
    %124 = arith.mulf %92, %123 : vector<8x128xf32>
    %125 = arith.addf %122, %124 : vector<8x128xf32>
    %cst_58 = arith.constant -0.375716716 : f32
    %126 = vector.broadcast %cst_58 : f32 to vector<8x128xf32>
    %127 = arith.mulf %98, %126 : vector<8x128xf32>
    %128 = arith.addf %125, %127 : vector<8x128xf32>
    %cst_59 = arith.constant 0.17062442 : f32
    %129 = vector.broadcast %cst_59 : f32 to vector<8x128xf32>
    %130 = arith.mulf %104, %129 : vector<8x128xf32>
    %131 = arith.addf %128, %130 : vector<8x128xf32>
    %cst_60 = arith.constant 0.147189513 : f32
    %132 = vector.broadcast %cst_60 : f32 to vector<8x128xf32>
    %133 = arith.mulf %110, %132 : vector<8x128xf32>
    %134 = arith.addf %131, %133 : vector<8x128xf32>
    %cst_61 = arith.constant 0.257728845 : f32
    %135 = vector.broadcast %cst_61 : f32 to vector<8x128xf32>
    %136 = arith.addf %134, %135 : vector<8x128xf32>
    %cst_62 = arith.constant 0.000000e+00 : f32
    %137 = vector.broadcast %cst_62 : f32 to vector<8x128xf32>
    %138 = arith.maximumf %136, %137 : vector<8x128xf32>
    %cst_63 = arith.constant -0.385067374 : f32
    %139 = vector.broadcast %cst_63 : f32 to vector<8x128xf32>
    %140 = arith.mulf %138, %139 : vector<8x128xf32>
    %141 = arith.addf %111, %140 : vector<8x128xf32>
    %cst_64 = arith.constant 0.115385115 : f32
    %142 = vector.broadcast %cst_64 : f32 to vector<8x128xf32>
    %143 = arith.mulf %68, %142 : vector<8x128xf32>
    %cst_65 = arith.constant -0.116322443 : f32
    %144 = vector.broadcast %cst_65 : f32 to vector<8x128xf32>
    %145 = arith.mulf %74, %144 : vector<8x128xf32>
    %146 = arith.addf %143, %145 : vector<8x128xf32>
    %cst_66 = arith.constant 0.497209936 : f32
    %147 = vector.broadcast %cst_66 : f32 to vector<8x128xf32>
    %148 = arith.mulf %80, %147 : vector<8x128xf32>
    %149 = arith.addf %146, %148 : vector<8x128xf32>
    %cst_67 = arith.constant 0.480835348 : f32
    %150 = vector.broadcast %cst_67 : f32 to vector<8x128xf32>
    %151 = arith.mulf %86, %150 : vector<8x128xf32>
    %152 = arith.addf %149, %151 : vector<8x128xf32>
    %cst_68 = arith.constant 0.185541987 : f32
    %153 = vector.broadcast %cst_68 : f32 to vector<8x128xf32>
    %154 = arith.mulf %92, %153 : vector<8x128xf32>
    %155 = arith.addf %152, %154 : vector<8x128xf32>
    %cst_69 = arith.constant 0.150459275 : f32
    %156 = vector.broadcast %cst_69 : f32 to vector<8x128xf32>
    %157 = arith.mulf %98, %156 : vector<8x128xf32>
    %158 = arith.addf %155, %157 : vector<8x128xf32>
    %cst_70 = arith.constant 0.18844673 : f32
    %159 = vector.broadcast %cst_70 : f32 to vector<8x128xf32>
    %160 = arith.mulf %104, %159 : vector<8x128xf32>
    %161 = arith.addf %158, %160 : vector<8x128xf32>
    %cst_71 = arith.constant -0.111078575 : f32
    %162 = vector.broadcast %cst_71 : f32 to vector<8x128xf32>
    %163 = arith.mulf %110, %162 : vector<8x128xf32>
    %164 = arith.addf %161, %163 : vector<8x128xf32>
    %cst_72 = arith.constant -0.00257730461 : f32
    %165 = vector.broadcast %cst_72 : f32 to vector<8x128xf32>
    %166 = arith.addf %164, %165 : vector<8x128xf32>
    %cst_73 = arith.constant 0.000000e+00 : f32
    %167 = vector.broadcast %cst_73 : f32 to vector<8x128xf32>
    %168 = arith.maximumf %166, %167 : vector<8x128xf32>
    %cst_74 = arith.constant 0.229015112 : f32
    %169 = vector.broadcast %cst_74 : f32 to vector<8x128xf32>
    %170 = arith.mulf %168, %169 : vector<8x128xf32>
    %171 = arith.addf %141, %170 : vector<8x128xf32>
    %cst_75 = arith.constant -0.36490351 : f32
    %172 = vector.broadcast %cst_75 : f32 to vector<8x128xf32>
    %173 = arith.mulf %68, %172 : vector<8x128xf32>
    %cst_76 = arith.constant 0.221488342 : f32
    %174 = vector.broadcast %cst_76 : f32 to vector<8x128xf32>
    %175 = arith.mulf %74, %174 : vector<8x128xf32>
    %176 = arith.addf %173, %175 : vector<8x128xf32>
    %cst_77 = arith.constant 0.025354322 : f32
    %177 = vector.broadcast %cst_77 : f32 to vector<8x128xf32>
    %178 = arith.mulf %80, %177 : vector<8x128xf32>
    %179 = arith.addf %176, %178 : vector<8x128xf32>
    %cst_78 = arith.constant -0.189758122 : f32
    %180 = vector.broadcast %cst_78 : f32 to vector<8x128xf32>
    %181 = arith.mulf %86, %180 : vector<8x128xf32>
    %182 = arith.addf %179, %181 : vector<8x128xf32>
    %cst_79 = arith.constant -0.0141646415 : f32
    %183 = vector.broadcast %cst_79 : f32 to vector<8x128xf32>
    %184 = arith.mulf %92, %183 : vector<8x128xf32>
    %185 = arith.addf %182, %184 : vector<8x128xf32>
    %cst_80 = arith.constant 0.389487833 : f32
    %186 = vector.broadcast %cst_80 : f32 to vector<8x128xf32>
    %187 = arith.mulf %98, %186 : vector<8x128xf32>
    %188 = arith.addf %185, %187 : vector<8x128xf32>
    %cst_81 = arith.constant 0.434043527 : f32
    %189 = vector.broadcast %cst_81 : f32 to vector<8x128xf32>
    %190 = arith.mulf %104, %189 : vector<8x128xf32>
    %191 = arith.addf %188, %190 : vector<8x128xf32>
    %cst_82 = arith.constant -0.142204806 : f32
    %192 = vector.broadcast %cst_82 : f32 to vector<8x128xf32>
    %193 = arith.mulf %110, %192 : vector<8x128xf32>
    %194 = arith.addf %191, %193 : vector<8x128xf32>
    %cst_83 = arith.constant 0.0293121599 : f32
    %195 = vector.broadcast %cst_83 : f32 to vector<8x128xf32>
    %196 = arith.addf %194, %195 : vector<8x128xf32>
    %cst_84 = arith.constant 0.000000e+00 : f32
    %197 = vector.broadcast %cst_84 : f32 to vector<8x128xf32>
    %198 = arith.maximumf %196, %197 : vector<8x128xf32>
    %cst_85 = arith.constant 0.427423924 : f32
    %199 = vector.broadcast %cst_85 : f32 to vector<8x128xf32>
    %200 = arith.mulf %198, %199 : vector<8x128xf32>
    %201 = arith.addf %171, %200 : vector<8x128xf32>
    %cst_86 = arith.constant 0.071529828 : f32
    %202 = vector.broadcast %cst_86 : f32 to vector<8x128xf32>
    %203 = arith.mulf %68, %202 : vector<8x128xf32>
    %cst_87 = arith.constant -0.178130612 : f32
    %204 = vector.broadcast %cst_87 : f32 to vector<8x128xf32>
    %205 = arith.mulf %74, %204 : vector<8x128xf32>
    %206 = arith.addf %203, %205 : vector<8x128xf32>
    %cst_88 = arith.constant 0.0943000316 : f32
    %207 = vector.broadcast %cst_88 : f32 to vector<8x128xf32>
    %208 = arith.mulf %80, %207 : vector<8x128xf32>
    %209 = arith.addf %206, %208 : vector<8x128xf32>
    %cst_89 = arith.constant -0.162088782 : f32
    %210 = vector.broadcast %cst_89 : f32 to vector<8x128xf32>
    %211 = arith.mulf %86, %210 : vector<8x128xf32>
    %212 = arith.addf %209, %211 : vector<8x128xf32>
    %cst_90 = arith.constant -1.083810e-01 : f32
    %213 = vector.broadcast %cst_90 : f32 to vector<8x128xf32>
    %214 = arith.mulf %92, %213 : vector<8x128xf32>
    %215 = arith.addf %212, %214 : vector<8x128xf32>
    %cst_91 = arith.constant 0.390274346 : f32
    %216 = vector.broadcast %cst_91 : f32 to vector<8x128xf32>
    %217 = arith.mulf %98, %216 : vector<8x128xf32>
    %218 = arith.addf %215, %217 : vector<8x128xf32>
    %cst_92 = arith.constant -0.272842407 : f32
    %219 = vector.broadcast %cst_92 : f32 to vector<8x128xf32>
    %220 = arith.mulf %104, %219 : vector<8x128xf32>
    %221 = arith.addf %218, %220 : vector<8x128xf32>
    %cst_93 = arith.constant 0.123187147 : f32
    %222 = vector.broadcast %cst_93 : f32 to vector<8x128xf32>
    %223 = arith.mulf %110, %222 : vector<8x128xf32>
    %224 = arith.addf %221, %223 : vector<8x128xf32>
    %cst_94 = arith.constant 0.285785705 : f32
    %225 = vector.broadcast %cst_94 : f32 to vector<8x128xf32>
    %226 = arith.addf %224, %225 : vector<8x128xf32>
    %cst_95 = arith.constant 0.000000e+00 : f32
    %227 = vector.broadcast %cst_95 : f32 to vector<8x128xf32>
    %228 = arith.maximumf %226, %227 : vector<8x128xf32>
    %cst_96 = arith.constant 0.467926204 : f32
    %229 = vector.broadcast %cst_96 : f32 to vector<8x128xf32>
    %230 = arith.mulf %228, %229 : vector<8x128xf32>
    %231 = arith.addf %201, %230 : vector<8x128xf32>
    %cst_97 = arith.constant -0.41598466 : f32
    %232 = vector.broadcast %cst_97 : f32 to vector<8x128xf32>
    %233 = arith.mulf %68, %232 : vector<8x128xf32>
    %cst_98 = arith.constant 0.332644135 : f32
    %234 = vector.broadcast %cst_98 : f32 to vector<8x128xf32>
    %235 = arith.mulf %74, %234 : vector<8x128xf32>
    %236 = arith.addf %233, %235 : vector<8x128xf32>
    %cst_99 = arith.constant 0.287098318 : f32
    %237 = vector.broadcast %cst_99 : f32 to vector<8x128xf32>
    %238 = arith.mulf %80, %237 : vector<8x128xf32>
    %239 = arith.addf %236, %238 : vector<8x128xf32>
    %cst_100 = arith.constant -0.260630548 : f32
    %240 = vector.broadcast %cst_100 : f32 to vector<8x128xf32>
    %241 = arith.mulf %86, %240 : vector<8x128xf32>
    %242 = arith.addf %239, %241 : vector<8x128xf32>
    %cst_101 = arith.constant 0.376484245 : f32
    %243 = vector.broadcast %cst_101 : f32 to vector<8x128xf32>
    %244 = arith.mulf %92, %243 : vector<8x128xf32>
    %245 = arith.addf %242, %244 : vector<8x128xf32>
    %cst_102 = arith.constant -0.441431969 : f32
    %246 = vector.broadcast %cst_102 : f32 to vector<8x128xf32>
    %247 = arith.mulf %98, %246 : vector<8x128xf32>
    %248 = arith.addf %245, %247 : vector<8x128xf32>
    %cst_103 = arith.constant -0.163882941 : f32
    %249 = vector.broadcast %cst_103 : f32 to vector<8x128xf32>
    %250 = arith.mulf %104, %249 : vector<8x128xf32>
    %251 = arith.addf %248, %250 : vector<8x128xf32>
    %cst_104 = arith.constant -0.349720538 : f32
    %252 = vector.broadcast %cst_104 : f32 to vector<8x128xf32>
    %253 = arith.mulf %110, %252 : vector<8x128xf32>
    %254 = arith.addf %251, %253 : vector<8x128xf32>
    %cst_105 = arith.constant -0.0853441507 : f32
    %255 = vector.broadcast %cst_105 : f32 to vector<8x128xf32>
    %256 = arith.addf %254, %255 : vector<8x128xf32>
    %cst_106 = arith.constant 0.000000e+00 : f32
    %257 = vector.broadcast %cst_106 : f32 to vector<8x128xf32>
    %258 = arith.maximumf %256, %257 : vector<8x128xf32>
    %cst_107 = arith.constant -0.485293686 : f32
    %259 = vector.broadcast %cst_107 : f32 to vector<8x128xf32>
    %260 = arith.mulf %258, %259 : vector<8x128xf32>
    %261 = arith.addf %231, %260 : vector<8x128xf32>
    %cst_108 = arith.constant -0.0496606342 : f32
    %262 = vector.broadcast %cst_108 : f32 to vector<8x128xf32>
    %263 = arith.mulf %68, %262 : vector<8x128xf32>
    %cst_109 = arith.constant 0.296324283 : f32
    %264 = vector.broadcast %cst_109 : f32 to vector<8x128xf32>
    %265 = arith.mulf %74, %264 : vector<8x128xf32>
    %266 = arith.addf %263, %265 : vector<8x128xf32>
    %cst_110 = arith.constant -0.2693578 : f32
    %267 = vector.broadcast %cst_110 : f32 to vector<8x128xf32>
    %268 = arith.mulf %80, %267 : vector<8x128xf32>
    %269 = arith.addf %266, %268 : vector<8x128xf32>
    %cst_111 = arith.constant -0.447978705 : f32
    %270 = vector.broadcast %cst_111 : f32 to vector<8x128xf32>
    %271 = arith.mulf %86, %270 : vector<8x128xf32>
    %272 = arith.addf %269, %271 : vector<8x128xf32>
    %cst_112 = arith.constant -0.0954481586 : f32
    %273 = vector.broadcast %cst_112 : f32 to vector<8x128xf32>
    %274 = arith.mulf %92, %273 : vector<8x128xf32>
    %275 = arith.addf %272, %274 : vector<8x128xf32>
    %cst_113 = arith.constant -0.301486969 : f32
    %276 = vector.broadcast %cst_113 : f32 to vector<8x128xf32>
    %277 = arith.mulf %98, %276 : vector<8x128xf32>
    %278 = arith.addf %275, %277 : vector<8x128xf32>
    %cst_114 = arith.constant -0.409246951 : f32
    %279 = vector.broadcast %cst_114 : f32 to vector<8x128xf32>
    %280 = arith.mulf %104, %279 : vector<8x128xf32>
    %281 = arith.addf %278, %280 : vector<8x128xf32>
    %cst_115 = arith.constant 0.0803323835 : f32
    %282 = vector.broadcast %cst_115 : f32 to vector<8x128xf32>
    %283 = arith.mulf %110, %282 : vector<8x128xf32>
    %284 = arith.addf %281, %283 : vector<8x128xf32>
    %cst_116 = arith.constant 0.23448357 : f32
    %285 = vector.broadcast %cst_116 : f32 to vector<8x128xf32>
    %286 = arith.addf %284, %285 : vector<8x128xf32>
    %cst_117 = arith.constant 0.000000e+00 : f32
    %287 = vector.broadcast %cst_117 : f32 to vector<8x128xf32>
    %288 = arith.maximumf %286, %287 : vector<8x128xf32>
    %cst_118 = arith.constant 0.3636401 : f32
    %289 = vector.broadcast %cst_118 : f32 to vector<8x128xf32>
    %290 = arith.mulf %288, %289 : vector<8x128xf32>
    %291 = arith.addf %261, %290 : vector<8x128xf32>
    %cst_119 = arith.constant -0.201303869 : f32
    %292 = vector.broadcast %cst_119 : f32 to vector<8x128xf32>
    %293 = arith.mulf %68, %292 : vector<8x128xf32>
    %cst_120 = arith.constant 0.17199488 : f32
    %294 = vector.broadcast %cst_120 : f32 to vector<8x128xf32>
    %295 = arith.mulf %74, %294 : vector<8x128xf32>
    %296 = arith.addf %293, %295 : vector<8x128xf32>
    %cst_121 = arith.constant -0.300484568 : f32
    %297 = vector.broadcast %cst_121 : f32 to vector<8x128xf32>
    %298 = arith.mulf %80, %297 : vector<8x128xf32>
    %299 = arith.addf %296, %298 : vector<8x128xf32>
    %cst_122 = arith.constant 0.442113101 : f32
    %300 = vector.broadcast %cst_122 : f32 to vector<8x128xf32>
    %301 = arith.mulf %86, %300 : vector<8x128xf32>
    %302 = arith.addf %299, %301 : vector<8x128xf32>
    %cst_123 = arith.constant -0.134889826 : f32
    %303 = vector.broadcast %cst_123 : f32 to vector<8x128xf32>
    %304 = arith.mulf %92, %303 : vector<8x128xf32>
    %305 = arith.addf %302, %304 : vector<8x128xf32>
    %cst_124 = arith.constant -0.394504726 : f32
    %306 = vector.broadcast %cst_124 : f32 to vector<8x128xf32>
    %307 = arith.mulf %98, %306 : vector<8x128xf32>
    %308 = arith.addf %305, %307 : vector<8x128xf32>
    %cst_125 = arith.constant 0.129108146 : f32
    %309 = vector.broadcast %cst_125 : f32 to vector<8x128xf32>
    %310 = arith.mulf %104, %309 : vector<8x128xf32>
    %311 = arith.addf %308, %310 : vector<8x128xf32>
    %cst_126 = arith.constant 0.427154541 : f32
    %312 = vector.broadcast %cst_126 : f32 to vector<8x128xf32>
    %313 = arith.mulf %110, %312 : vector<8x128xf32>
    %314 = arith.addf %311, %313 : vector<8x128xf32>
    %cst_127 = arith.constant 0.211142883 : f32
    %315 = vector.broadcast %cst_127 : f32 to vector<8x128xf32>
    %316 = arith.addf %314, %315 : vector<8x128xf32>
    %cst_128 = arith.constant 0.000000e+00 : f32
    %317 = vector.broadcast %cst_128 : f32 to vector<8x128xf32>
    %318 = arith.maximumf %316, %317 : vector<8x128xf32>
    %cst_129 = arith.constant 0.481195033 : f32
    %319 = vector.broadcast %cst_129 : f32 to vector<8x128xf32>
    %320 = arith.mulf %318, %319 : vector<8x128xf32>
    %321 = arith.addf %291, %320 : vector<8x128xf32>
    %cst_130 = arith.constant -0.0596228465 : f32
    %322 = vector.broadcast %cst_130 : f32 to vector<8x128xf32>
    %323 = arith.mulf %68, %322 : vector<8x128xf32>
    %cst_131 = arith.constant 0.454590499 : f32
    %324 = vector.broadcast %cst_131 : f32 to vector<8x128xf32>
    %325 = arith.mulf %74, %324 : vector<8x128xf32>
    %326 = arith.addf %323, %325 : vector<8x128xf32>
    %cst_132 = arith.constant -1.04186314E-4 : f32
    %327 = vector.broadcast %cst_132 : f32 to vector<8x128xf32>
    %328 = arith.mulf %80, %327 : vector<8x128xf32>
    %329 = arith.addf %326, %328 : vector<8x128xf32>
    %cst_133 = arith.constant -0.0747713744 : f32
    %330 = vector.broadcast %cst_133 : f32 to vector<8x128xf32>
    %331 = arith.mulf %86, %330 : vector<8x128xf32>
    %332 = arith.addf %329, %331 : vector<8x128xf32>
    %cst_134 = arith.constant 0.120213449 : f32
    %333 = vector.broadcast %cst_134 : f32 to vector<8x128xf32>
    %334 = arith.mulf %92, %333 : vector<8x128xf32>
    %335 = arith.addf %332, %334 : vector<8x128xf32>
    %cst_135 = arith.constant 0.495096505 : f32
    %336 = vector.broadcast %cst_135 : f32 to vector<8x128xf32>
    %337 = arith.mulf %98, %336 : vector<8x128xf32>
    %338 = arith.addf %335, %337 : vector<8x128xf32>
    %cst_136 = arith.constant 0.448943675 : f32
    %339 = vector.broadcast %cst_136 : f32 to vector<8x128xf32>
    %340 = arith.mulf %104, %339 : vector<8x128xf32>
    %341 = arith.addf %338, %340 : vector<8x128xf32>
    %cst_137 = arith.constant -0.0399548598 : f32
    %342 = vector.broadcast %cst_137 : f32 to vector<8x128xf32>
    %343 = arith.mulf %110, %342 : vector<8x128xf32>
    %344 = arith.addf %341, %343 : vector<8x128xf32>
    %cst_138 = arith.constant 0.432059675 : f32
    %345 = vector.broadcast %cst_138 : f32 to vector<8x128xf32>
    %346 = arith.addf %344, %345 : vector<8x128xf32>
    %cst_139 = arith.constant 0.000000e+00 : f32
    %347 = vector.broadcast %cst_139 : f32 to vector<8x128xf32>
    %348 = arith.maximumf %346, %347 : vector<8x128xf32>
    %cst_140 = arith.constant 0.457210183 : f32
    %349 = vector.broadcast %cst_140 : f32 to vector<8x128xf32>
    %350 = arith.mulf %348, %349 : vector<8x128xf32>
    %351 = arith.addf %321, %350 : vector<8x128xf32>
    %cst_141 = arith.constant 0.000000e+00 : f32
    %352 = vector.broadcast %cst_141 : f32 to vector<8x128xf32>
    %353 = arith.subf %352, %351 : vector<8x128xf32>
    %354 = math.exp %353 : vector<8x128xf32>
    %cst_142 = arith.constant 1.000000e+00 : f32
    %355 = vector.broadcast %cst_142 : f32 to vector<8x128xf32>
    %356 = arith.addf %355, %354 : vector<8x128xf32>
    %cst_143 = arith.constant 9.99999997E-7 : f32
    %357 = vector.broadcast %cst_143 : f32 to vector<8x128xf32>
    %358 = arith.mulf %357, %356 : vector<8x128xf32>
    %cst_144 = arith.constant 1.000000e+00 : f32
    %359 = vector.broadcast %cst_144 : f32 to vector<8x128xf32>
    %360 = arith.addf %359, %358 : vector<8x128xf32>
    %361 = arith.divf %356, %360 : vector<8x128xf32>
    %362 = math.exp %361 : vector<8x128xf32>
    %363 = arith.mulf %362, %4 : vector<8x128xf32>
    %364 = arith.mulf %24, %24 : vector<8x16x128xf32>
    %cst_145 = arith.constant dense<0.000000e+00> : vector<8x128xf32>
    %365 = vector.multi_reduction <add>, %364, %cst_145 [1] : vector<8x16x128xf32> to vector<8x128xf32>
    %cst_146 = arith.constant 1.000000e+00 : f32
    %366 = vector.broadcast %cst_146 : f32 to vector<8x128xf32>
    %367 = arith.subf %366, %365 : vector<8x128xf32>
    %368 = math.rsqrt %367 : vector<8x128xf32>
    %369 = arith.mulf %363, %368 : vector<8x128xf32>
    %370 = vector.shape_cast %369 : vector<8x128xf32> to vector<8x1x128xf32>
    %371 = vector.broadcast %370 : vector<8x1x128xf32> to vector<8x16x128xf32>
    %372 = arith.mulf %371, %24 : vector<8x16x128xf32>
    %cst_147 = arith.constant dense<0.000000e+00> : vector<16x128xf32>
    %373 = vector.multi_reduction <add>, %372, %cst_147 [0] : vector<8x16x128xf32> to vector<16x128xf32>
    %cst_148 = arith.constant dense<0.000000e+00> : vector<128xf32>
    %374 = vector.multi_reduction <add>, %369, %cst_148 [0] : vector<8x128xf32> to vector<128xf32>
    %375 = vector.shape_cast %374 : vector<128xf32> to vector<1x128xf32>
    %376 = vector.broadcast %375 : vector<1x128xf32> to vector<16x128xf32>
    %377 = arith.divf %373, %376 : vector<16x128xf32>
    %378 = vector.broadcast %3 : vector<1x128xf32> to vector<16x128xf32>
    %379 = arith.mulf %377, %378 : vector<16x128xf32>
    %380 = arith.mulf %17, %17 : vector<16x128xf32>
    %cst_149 = arith.constant dense<0.000000e+00> : vector<128xf32>
    %381 = vector.multi_reduction <add>, %380, %cst_149 [0] : vector<16x128xf32> to vector<128xf32>
    %382 = vector.shape_cast %381 : vector<128xf32> to vector<1x128xf32>
    %cst_150 = arith.constant 1.000000e+00 : f32
    %383 = vector.broadcast %cst_150 : f32 to vector<1x128xf32>
    %384 = arith.subf %383, %382 : vector<1x128xf32>
    %385 = math.rsqrt %384 : vector<1x128xf32>
    %386 = arith.mulf %379, %379 : vector<16x128xf32>
    %cst_151 = arith.constant dense<0.000000e+00> : vector<128xf32>
    %387 = vector.multi_reduction <add>, %386, %cst_151 [0] : vector<16x128xf32> to vector<128xf32>
    %388 = vector.shape_cast %387 : vector<128xf32> to vector<1x128xf32>
    %cst_152 = arith.constant 1.000000e+00 : f32
    %389 = vector.broadcast %cst_152 : f32 to vector<1x128xf32>
    %390 = arith.subf %389, %388 : vector<1x128xf32>
    %391 = math.rsqrt %390 : vector<1x128xf32>
    %cst_153 = arith.constant 0.972628831 : f32
    %392 = vector.broadcast %cst_153 : f32 to vector<1x128xf32>
    %393 = arith.mulf %392, %385 : vector<1x128xf32>
    %cst_154 = arith.constant 0.0273711868 : f32
    %394 = vector.broadcast %cst_154 : f32 to vector<1x128xf32>
    %395 = arith.mulf %394, %391 : vector<1x128xf32>
    %396 = vector.broadcast %393 : vector<1x128xf32> to vector<16x128xf32>
    %397 = arith.mulf %396, %17 : vector<16x128xf32>
    %398 = vector.broadcast %395 : vector<1x128xf32> to vector<16x128xf32>
    %399 = arith.mulf %398, %379 : vector<16x128xf32>
    %400 = arith.addf %397, %399 : vector<16x128xf32>
    %401 = arith.addf %393, %395 : vector<1x128xf32>
    %402 = vector.broadcast %401 : vector<1x128xf32> to vector<16x128xf32>
    %403 = arith.divf %400, %402 : vector<16x128xf32>
    %404 = arith.mulf %403, %403 : vector<16x128xf32>
    %cst_155 = arith.constant dense<0.000000e+00> : vector<128xf32>
    %405 = vector.multi_reduction <add>, %404, %cst_155 [0] : vector<16x128xf32> to vector<128xf32>
    %406 = vector.shape_cast %405 : vector<128xf32> to vector<1x128xf32>
    %cst_156 = arith.constant 1.000000e+00 : f32
    %407 = vector.broadcast %cst_156 : f32 to vector<1x128xf32>
    %408 = arith.subf %407, %406 : vector<1x128xf32>
    %cst_157 = arith.constant 0.000000e+00 : f32
    %409 = vector.broadcast %cst_157 : f32 to vector<1x128xf32>
    %410 = arith.maximumf %408, %409 : vector<1x128xf32>
    %411 = math.sqrt %410 : vector<1x128xf32>
    %cst_158 = arith.constant 1.000000e+00 : f32
    %412 = vector.broadcast %cst_158 : f32 to vector<1x128xf32>
    %413 = arith.addf %412, %411 : vector<1x128xf32>
    %414 = vector.broadcast %413 : vector<1x128xf32> to vector<16x128xf32>
    %415 = arith.divf %403, %414 : vector<16x128xf32>
    %c0_159 = arith.constant 0 : index
    %c0_160 = arith.constant 0 : index
    %416 = vector.load %arg6[%c0_159, %c0_160] : memref<16x128xf32, #tpu.memory_space<vmem>>, vector<16x128xf32>
    tpu.vector_store %arg6[%c0_159, %c0_160], %415 {strides = array<i32>} : memref<16x128xf32, #tpu.memory_space<vmem>>, vector<16x128xf32>,
    return
  }
  func.func @transform_0(%arg0: i32) -> (i32, i32) {
    %c0_i32 = arith.constant 0 : i32
    %c0_i32_0 = arith.constant 0 : i32
    return %c0_i32, %arg0 : i32, i32
  }
  func.func @transform_1(%arg0: i32) -> (i32, i32, i32) {
    %c0_i32 = arith.constant 0 : i32
    %c0_i32_0 = arith.constant 0 : i32
    %c0_i32_1 = arith.constant 0 : i32
    return %c0_i32, %c0_i32_0, %arg0 : i32, i32, i32
  }
  func.func @transform_2(%arg0: i32) -> (i32, i32, i32) {
    %c0_i32 = arith.constant 0 : i32
    %c0_i32_0 = arith.constant 0 : i32
    %c0_i32_1 = arith.constant 0 : i32
    return %c0_i32, %c0_i32_0, %arg0 : i32, i32, i32
  }
  func.func @transform_3(%arg0: i32) -> (i32, i32) {
    %c0_i32 = arith.constant 0 : i32
    %c0_i32_0 = arith.constant 0 : i32
    return %c0_i32, %arg0 : i32, i32
  }
  func.func @transform_4(%arg0: i32) -> (i32, i32) {
    %c0_i32 = arith.constant 0 : i32
    %c0_i32_0 = arith.constant 0 : i32
    return %c0_i32, %arg0 : i32, i32
  }
  func.func @transform_5(%arg0: i32) -> (i32, i32) {
    %c0_i32 = arith.constant 0 : i32
    %c0_i32_0 = arith.constant 0 : i32
    return %c0_i32, %arg0 : i32, i32
  }
}

</mosaic_0001>

<bundles_post_ra>
// kernel: tpu_custom_call.1
= control target key start
LH: loop header
LB: loop body
LE: loop exit
PB: predicated region body
PF: predicated region fallthrough
CT: control target
= control target key end

     0   :  { %10 = vsyncpa [#allocation3], 0  ;;  %s2624_s0 = inlined_call_operand.hbm [shape: f32[16,128], index: 0, kind: input, shape index: {}]   ;;  %s2625_s1 = inlined_call_operand.hbm [shape: f32[8,16,128], index: 1, kind: input, shape index: {}]   ;;  %s2626_s2 = inlined_call_operand.hbm [shape: f32[8,16,128], index: 2, kind: input, shape index: {}]   ;;  %s2627_s3 = inlined_call_operand.vmem [shape: f32[1,128], index: 3, kind: input, shape index: {}]   ;;  %s2628_s4 = inlined_call_operand.hbm [shape: f32[8,128], index: 4, kind: input, shape index: {}]   ;;  %s2629_s5 = inlined_call_operand.hbm [shape: f32[16,128], index: 5, kind: output, shape index: {}]  }
   0x1   :  { %11 = vsyncpa [#allocation6], 0 }
   0x2   :  { %12 = vsyncpa [#allocation9], 0 }
   0x3   :  { %13 = vsyncpa [#allocation4], 0  ;;  %s31_s20 = sshll.u32 %s2625_s1, 4  ;;  %s1567_s21 = smov [#allocation5]   ;;  %s32_s20 = int_to_ptr.hbm [resolvable:$true] %s31_s20 }
   0x4   :  { %s33_s22 = sshll.u32 %s1567_s21, 4  ;;  %s18_s25 = sshll.u32 %s2624_s0, 4  ;;  %s34_s22 = int_to_ptr.vmem [resolvable:$true] %s33_s22  ;;  %s19_s25 = int_to_ptr.hbm [resolvable:$true] %s18_s25 }
   0x5   :  { %s1568_s26 = smov 128   ;;  %s1569_s27 = smov 8  }
   0x6   :  { %39 = dma.hbm_to_vmem [thread:$0]  %s32_s20, 2048, %s34_s22, [#allocation6], %s1568_s26, %s1568_s26, %s1569_s27  }
   0x7   :  { %s1570_s28 = smov [#allocation2]   ;;  %s44_s1 = sshll.u32 %s2626_s2, 4  ;;  %s45_s1 = int_to_ptr.hbm [resolvable:$true] %s44_s1 }
   0x8   :  { %s20_s29 = sshll.u32 %s1570_s28, 4  ;;  %s60_s8 = sshll.u32 %s2628_s4, 4  ;;  %s21_s29 = int_to_ptr.vmem [resolvable:$true] %s20_s29  ;;  %s61_s8 = int_to_ptr.hbm [resolvable:$true] %s60_s8 }
   0x9   :  { %26 = dma.hbm_to_vmem [thread:$0]  %s19_s25, 256, %s21_s29, [#allocation3], %s1568_s26, %s1568_s26, %s1569_s27  }
   0xa   :  { %s1571_s9 = smov [#allocation7]   ;;  %s1572_s11 = smov [#allocation8]  }
   0xb   :  { %s46_s10 = sshll.u32 %s1571_s9, 4  ;;  %s62_s2 = sshll.u32 %s1572_s11, 4  ;;  %s47_s10 = int_to_ptr.vmem [resolvable:$true] %s46_s10  ;;  %s63_s2 = int_to_ptr.vmem [resolvable:$true] %s62_s2 }
   0xc   :  { %52 = dma.hbm_to_vmem [thread:$0]  %s45_s1, 2048, %s47_s10, [#allocation6], %s1568_s26, %s1568_s26, %s1569_s27  }
   0xd   :  { %65 = dma.hbm_to_vmem [thread:$0]  %s61_s8, 128, %s63_s2, [#allocation9]  }
   0xe   :  { %1559 = dma.done.wait [#allocation3], 256  }
   0xf   :  { %1560 = vsyncadd [#allocation3], 4294967040 }
  0x10   :  { %1561 = dma.done.wait [#allocation6], 4096  }
  0x11   :  { %1562 = vsyncadd [#allocation6], 4294963200 }
  0x12   :  { %1563 = dma.done.wait [#allocation9], 128  }
  0x13   :  { %1564 = vsyncadd [#allocation9], 4294967168  ;;  %v1625_v0 = vld [vmem:[#allocation2] sm:$0xff]  ;;  %v1627_v1 = vld [vmem:[#allocation2 + $0x8] sm:$0xff]  ;;  %s1323_s16 = sshll.u32 %s2629_s5, 4  ;;  %s1324_s16 = int_to_ptr.hbm [resolvable:$true] %s1323_s16 }
  0x14   :  { %v1629_v2 = vld [vmem:[#allocation5] sm:$0xff]  ;;  %v1631_v3 = vld [vmem:[#allocation5 + $0x8] sm:$0xff]  ;;  %v118_v4 = vmul.f32 %v1625_v0, %v1625_v0  ;;  %v119_v5 = vmul.f32 %v1627_v1, %v1627_v1  ;;  %v1641_v9 = vld [vmem:[#allocation5 + $0x10] sm:$0xff] }
  0x15   :  { %v127_v6 = vmul.f32 %v1629_v2, %v1629_v2  ;;  %v128_v7 = vmul.f32 %v1631_v3, %v1631_v3  ;;  %v1643_v10 = vld [vmem:[#allocation5 + $0x18] sm:$0xff]  ;;  %v1645_v11 = vld [vmem:[#allocation5 + $0x20] sm:$0xff]  ;;  %v1647_v12 = vld [vmem:[#allocation5 + $0x28] sm:$0xff]  ;;  %v129_v20 = vmul.f32 %v1641_v9, %v1641_v9 }
  0x16   :  { %v120_v8 = vadd.f32 %v119_v5, %v118_v4  ;;  %v1649_v14 = vld [vmem:[#allocation5 + $0x30] sm:$0xff]  ;;  %v1651_v15 = vld [vmem:[#allocation5 + $0x38] sm:$0xff]  ;;  %v1653_v16 = vld [vmem:[#allocation5 + $0x40] sm:$0xff]  ;;  %v130_v21 = vmul.f32 %v1643_v10, %v1643_v10  ;;  %v131_v24 = vmul.f32 %v1645_v11, %v1645_v11  ;;  %v132_v25 = vmul.f32 %v1647_v12, %v1647_v12 }
  0x17   :  { %v143_v13 = vadd.f32 %v128_v7, %v127_v6  ;;  %v1655_v17 = vld [vmem:[#allocation5 + $0x48] sm:$0xff]  ;;  %v1657_v18 = vld [vmem:[#allocation5 + $0x50] sm:$0xff]  ;;  %v1663_v22 = vld [vmem:[#allocation5 + $0x58] sm:$0xff]  ;;  %v133_v29 = vmul.f32 %v1649_v14, %v1649_v14  ;;  %v134_v30 = vmul.f32 %v1651_v15, %v1651_v15  ;;  %v135_v32 = vmul.f32 %v1653_v16, %v1653_v16 }
  0x18   :  { %v121_v19 = vrot.slane %v120_v8, 4  ;;  %v1665_v23 = vld [vmem:[#allocation5 + $0x60] sm:$0xff]  ;;  %v1671_v26 = vld [vmem:[#allocation5 + $0x68] sm:$0xff]  ;;  %v1673_v27 = vld [vmem:[#allocation5 + $0x70] sm:$0xff]  ;;  %v136_v33 = vmul.f32 %v1655_v17, %v1655_v17  ;;  %v137_v34 = vmul.f32 %v1657_v18, %v1657_v18  ;;  %v138_v36 = vmul.f32 %v1663_v22, %v1663_v22 }
  0x19   :  { %2640 = vst [vmem:[#allocation15_spill] sm:$0xff] %v1673_v27  ;;  %v1675_v28 = vld [vmem:[#allocation5 + $0x78] sm:$0xff]  ;;  %v144_v31 = vrot.slane %v143_v13, 4  ;;  %v139_v37 = vmul.f32 %v1665_v23, %v1665_v23  ;;  %v150_v38 = vadd.f32 %v130_v21, %v129_v20  ;;  %v100_v39 = vld [vmem:[#allocation7] sm:$0xff]  ;;  %v101_v40 = vld [vmem:[#allocation7 + $0x8] sm:$0xff]  ;;  %v140_v41 = vmul.f32 %v1671_v26, %v1671_v26 }
  0x1a   :  { %2641 = vst [vmem:[#allocation16_spill] sm:$0xff] %v1675_v28  ;;  %v122_v35 = vadd.f32 %v121_v19, %v120_v8  ;;  %v141_v42 = vmul.f32 %v1673_v27, %v1673_v27  ;;  %v142_v43 = vmul.f32 %v1675_v28, %v1675_v28  ;;  %v157_v44 = vadd.f32 %v132_v25, %v131_v24  ;;  %v102_v47 = vld [vmem:[#allocation7 + $0x10] sm:$0xff]  ;;  %v103_v48 = vld [vmem:[#allocation7 + $0x18] sm:$0xff]  ;;  %v104_v49 = vld [vmem:[#allocation7 + $0x20] sm:$0xff] }
  0x1b   :  { %v145_v45 = vadd.f32 %v144_v31, %v143_v13  ;;  %v164_v46 = vadd.f32 %v134_v30, %v133_v29  ;;  %v171_v50 = vadd.f32 %v136_v33, %v135_v32  ;;  %v105_v51 = vld [vmem:[#allocation7 + $0x28] sm:$0xff]  ;;  %v106_v52 = vld [vmem:[#allocation7 + $0x30] sm:$0xff]  ;;  %v107_v53 = vld [vmem:[#allocation7 + $0x38] sm:$0xff]  ;;  %v151_v55 = vrot.slane %v150_v38, 4 }
  0x1c   :  { %v123_v54 = vrot.slane %v122_v35, 2  ;;  %v199_v56 = vmul.f32 %v100_v39, %v100_v39  ;;  %v200_v57 = vmul.f32 %v101_v40, %v101_v40  ;;  %v108_v58 = vld [vmem:[#allocation7 + $0x40] sm:$0xff]  ;;  %v158_v59 = vrot.slane %v157_v44, 4  ;;  %v109_v63 = vld [vmem:[#allocation7 + $0x48] sm:$0xff]  ;;  %v110_v4 = vld [vmem:[#allocation7 + $0x50] sm:$0xff] }
  0x1d   :  { %v178_v60 = vadd.f32 %v138_v36, %v137_v34  ;;  %v185_v61 = vadd.f32 %v140_v41, %v139_v37  ;;  %v192_v62 = vadd.f32 %v142_v43, %v141_v42  ;;  %v111_v5 = vld [vmem:[#allocation7 + $0x58] sm:$0xff]  ;;  %v146_v6 = vrot.slane %v145_v45, 2  ;;  %v112_v19 = vld [vmem:[#allocation7 + $0x60] sm:$0xff]  ;;  %v113_v20 = vld [vmem:[#allocation7 + $0x68] sm:$0xff] }
  0x1e   :  { %v165_v7 = vrot.slane %v164_v46, 4  ;;  %v201_v8 = vmul.f32 %v102_v47, %v102_v47  ;;  %v202_v13 = vmul.f32 %v103_v48, %v103_v48  ;;  %v203_v21 = vmul.f32 %v104_v49, %v104_v49  ;;  %v114_v49 = vld [vmem:[#allocation7 + $0x70] sm:$0xff] }
  0x1f   :  { %v204_v24 = vmul.f32 %v105_v51, %v105_v51  ;;  %v205_v25 = vmul.f32 %v106_v52, %v106_v52  ;;  %v206_v29 = vmul.f32 %v107_v53, %v107_v53  ;;  %v124_v30 = vadd.f32 %v123_v54, %v122_v35  ;;  %v115_v51 = vld [vmem:[#allocation7 + $0x78] sm:$0xff] }
  0x20   :  { %v152_v31 = vadd.f32 %v151_v55, %v150_v38  ;;  %v172_v32 = vrot.slane %v171_v50, 4  ;;  %v215_v33 = vadd.f32 %v200_v57, %v199_v56  ;;  %v207_v34 = vmul.f32 %v108_v58, %v108_v58 }
  0x21   :  { %v208_v36 = vmul.f32 %v109_v63, %v109_v63  ;;  %v209_v37 = vmul.f32 %v110_v4, %v110_v4  ;;  %v210_v39 = vmul.f32 %v111_v5, %v111_v5  ;;  %v159_v40 = vadd.f32 %v158_v59, %v157_v44 }
  0x22   :  { %v211_v41 = vmul.f32 %v112_v19, %v112_v19  ;;  %v212_v42 = vmul.f32 %v113_v20, %v113_v20  ;;  %v222_v43 = vadd.f32 %v202_v13, %v201_v8  ;;  %v147_v47 = vadd.f32 %v146_v6, %v145_v45 }
  0x23   :  { %v179_v48 = vrot.slane %v178_v60, 4  ;;  %v229_v28 = vadd.f32 %v204_v24, %v203_v21  ;;  %v236_v27 = vadd.f32 %v206_v29, %v205_v25  ;;  %v166_v52 = vadd.f32 %v165_v7, %v164_v46 }
  0x24   :  { %v173_v53 = vadd.f32 %v172_v32, %v171_v50  ;;  %v186_v35 = vrot.slane %v185_v61, 4  ;;  %v216_v38 = vrot.slane %v215_v33, 4  ;;  %v125_v54 = vrot.slane %v124_v30, 1 }
  0x25   :  { %v193_v55 = vrot.slane %v192_v62, 4  ;;  %v243_v56 = vadd.f32 %v208_v36, %v207_v34  ;;  %v250_v57 = vadd.f32 %v210_v39, %v209_v37  ;;  %v153_v58 = vrot.slane %v152_v31, 2 }
  0x26   :  { %v160_v63 = vrot.slane %v159_v40, 2  ;;  %v223_v44 = vrot.slane %v222_v43, 4  ;;  %v257_v59 = vadd.f32 %v212_v42, %v211_v41  ;;  %v213_v4 = vmul.f32 %v114_v49, %v114_v49 }
  0x27   :  { %v214_v5 = vmul.f32 %v115_v51, %v115_v51  ;;  %v230_v45 = vrot.slane %v229_v28, 4  ;;  %v237_v6 = vrot.slane %v236_v27, 4  ;;  %v148_v8 = vrot.slane %v147_v47, 1 }
  0x28   :  { %v180_v13 = vadd.f32 %v179_v48, %v178_v60  ;;  %v187_v19 = vadd.f32 %v186_v35, %v185_v61  ;;  %v217_v20 = vadd.f32 %v216_v38, %v215_v33  ;;  %v167_v46 = vrot.slane %v166_v52, 2 }
  0x29   :  { %v194_v50 = vadd.f32 %v193_v55, %v192_v62  ;;  %v244_v7 = vrot.slane %v243_v56, 4  ;;  %v251_v21 = vrot.slane %v250_v57, 4  ;;  %v154_v24 = vadd.f32 %v153_v58, %v152_v31 }
  0x2a   :  { %v174_v25 = vrot.slane %v173_v53, 2  ;;  %v224_v29 = vadd.f32 %v223_v44, %v222_v43  ;;  %v258_v32 = vrot.slane %v257_v59, 4  ;;  %v161_v34 = vadd.f32 %v160_v63, %v159_v40 }
  0x2b   :  { %v231_v36 = vadd.f32 %v230_v45, %v229_v28  ;;  %v238_v37 = vadd.f32 %v237_v6, %v236_v27  ;;  %v264_v39 = vadd.f32 %v214_v5, %v213_v4  ;;  %v1697_v41 = vadd.f32 %v125_v54, %v124_v30 }
  0x2c   :  { %v181_v42 = vrot.slane %v180_v13, 2  ;;  %v188_v49 = vrot.slane %v187_v19, 2  ;;  %v218_v51 = vrot.slane %v217_v20, 2  ;;  %v168_v60 = vadd.f32 %v167_v46, %v166_v52 }
  0x2d   :  { %v195_v61 = vrot.slane %v194_v50, 2  ;;  %v245_v33 = vadd.f32 %v244_v7, %v243_v56  ;;  %v252_v48 = vadd.f32 %v251_v21, %v250_v57  ;;  %v155_v62 = vrot.slane %v154_v24, 1 }
  0x2e   :  { %v175_v35 = vadd.f32 %v174_v25, %v173_v53  ;;  %v225_v38 = vrot.slane %v224_v29, 2  ;;  %v259_v31 = vadd.f32 %v258_v32, %v257_v59  ;;  %v162_v55 = vrot.slane %v161_v34, 1 }
  0x2f   :  { %v232_v43 = vrot.slane %v231_v36, 2  ;;  %v239_v58 = vrot.slane %v238_v37, 2  ;;  %v265_v40 = vrot.slane %v264_v39, 4  ;;  %v1699_v28 = vadd.f32 %v148_v8, %v147_v47 }
  0x30   :  { %v182_v27 = vadd.f32 %v181_v42, %v180_v13  ;;  %v189_v30 = vadd.f32 %v188_v49, %v187_v19  ;;  %v219_v54 = vadd.f32 %v218_v51, %v217_v20  ;;  %v169_v63 = vrot.slane %v168_v60, 1 }
  0x31   :  { %v196_v44 = vadd.f32 %v195_v61, %v194_v50  ;;  %v246_v4 = vrot.slane %v245_v33, 2  ;;  %v253_v52 = vrot.slane %v252_v48, 2  ;;  %v1701_v5 = vadd.f32 %v155_v62, %v154_v24 }
  0x32   :  { %v176_v56 = vrot.slane %v175_v35, 1  ;;  %v226_v57 = vadd.f32 %v225_v38, %v224_v29  ;;  %v260_v53 = vrot.slane %v259_v31, 2  ;;  %v1703_v45 = vadd.f32 %v162_v55, %v161_v34 }
  0x33   :  { %v233_v59 = vadd.f32 %v232_v43, %v231_v36  ;;  %v240_v6 = vadd.f32 %v239_v58, %v238_v37  ;;  %v266_v46 = vadd.f32 %v265_v40, %v264_v39  ;;  %v183_v7 = vrot.slane %v182_v27, 1 }
  0x34   :  { %v190_v47 = vrot.slane %v189_v30, 1  ;;  %v220_v8 = vrot.slane %v219_v54, 1  ;;  %v433_v13 = vsub.f32 1.0, %v1697_v41  ;;  %v1706_v19 = vadd.f32 %v169_v63, %v168_v60 }
  0x35   :  { %v197_v20 = vrot.slane %v196_v44, 1  ;;  %v1708_v50 = vadd.f32 %v246_v4, %v245_v33  ;;  %v1710_v21 = vadd.f32 %v253_v52, %v252_v48  ;;  %v227_v24 = vrot.slane %v226_v57, 1 }
  0x36   :  { %v1712_v25 = vadd.f32 %v260_v53, %v259_v31  ;;  %1347 = vrcp.f32 %v433_v13  ;;  %v1715_v29 = vsub.f32 1.0, %v1699_v28  ;;  %v1717_v32 = vadd.f32 %v176_v56, %v175_v35 }
  0x37   :  { %2642 = vst [vmem:[#allocation17_spill] sm:$0xff] %v1710_v21  ;;  %v234_v34 = vrot.slane %v233_v59, 1  ;;  %v241_v36 = vrot.slane %v240_v6, 1  ;;  %v267_v37 = vrot.slane %v266_v46, 2  ;;  %v1719_v39 = vadd.f32 %v183_v7, %v182_v27 }
  0x38   :  { %2643 = vst [vmem:[#allocation18_spill] sm:$0xff] %v1712_v25  ;;  %v1721_v42 = vadd.f32 %v190_v47, %v189_v30  ;;  %v221_v49 = vadd.f32 %v220_v8, %v219_v54  ;;  %v1724_v51 = vsub.f32 1.0, %v1701_v5  ;;  %v1726_v60 = vadd.f32 %v197_v20, %v196_v44 }
  0x39   :  { %v443_v48 = vand.u32 2147483647, %v433_v13  ;;  %v1730_v62 = vadd.f32 %v227_v24, %v226_v57  ;;  %v445_v38 = vand.u32 2147483648, %v433_v13  ;;  %1349 = vrcp.f32 %v1715_v29 }
  0x3a   :  { %v1734_v31 = vadd.f32 %v234_v34, %v233_v59  ;;  %v1736_v55 = vadd.f32 %v241_v36, %v240_v6  ;;  %v1738_v43 = vadd.f32 %v267_v37, %v266_v46  ;;  %v1741_v58 = vsub.f32 1.0, %v1703_v45 }
  0x3b   :  { %v1744_v27 = vadd.f32 1.0, %v1697_v41  ;;  %v1746_v30 = vadd.f32 1.0, %v221_v49  ;;  %vm439_vm0 = vweird.f32 %v433_v13  ;;  %1351 = vrcp.f32 %v1724_v51 }
  0x3c   :  { %2644 = vst [vmem:[#allocation19_spill] sm:$0xff] %v1736_v55  ;;  %v1348_v40 = vpop.eup %1347  ;;  %vm1749_vm1 = vcmp.eq.f32.partialorder %v443_v48, 8.507059e+37  ;;  %v1754_v44 = vsub.f32 1.0, %v1706_v19  ;;  %v470_v4 = vand.u32 2147483647, %v1715_v29  ;;  %v446_v52 = vor.u32 1.1754944e-38, %v445_v38 }
  0x3d   :  { %v435_v54 = vmul.f32 %v1348_v40, %v433_v13  ;;  %v1758_v56 = vsub.f32 1.0, %v1717_v32  ;;  %v1761_v41 = vsub.f32 1.0, %v1719_v39  ;;  %v472_v57 = vand.u32 2147483648, %v1715_v29 }
  0x3e   :  { %vm440_vm2 = vweird.f32 %v1348_v40  ;;  %v1765_v59 = vsub.f32 1.0, %v1721_v42  ;;  %1353 = vrcp.f32 %v1741_v58  ;;  %v1769_v46 = vsub.f32 1.0, %v1726_v60 }
  0x3f   :  { %v436_v53 = vsub.f32 1.0, %v435_v54  ;;  %v1350_v6 = vpop.eup %1349  ;;  %vm466_vm3 = vweird.f32 %v1715_v29  ;;  %v485_v7 = vand.u32 2147483647, %v1724_v51  ;;  %v487_v47 = vand.u32 2147483648, %v1724_v51  ;;  %vm1783_vm6 = vmor %vm439_vm0, %vm440_vm2 }
  0x40   :  { %v462_v20 = vmul.f32 %v1350_v6, %v1715_v29  ;;  %vm1775_vm4 = vcmp.eq.f32.partialorder %v470_v4, 8.507059e+37  ;;  %vm481_vm5 = vweird.f32 %v1724_v51  ;;  %v473_v37 = vor.u32 1.1754944e-38, %v472_v57 }
  0x41   :  { %v437_v8 = vmul.f32 %v1348_v40, %v436_v53  ;;  %v1780_v34 = vpop.eup %1351  ;;  %vm496_vm7 = vweird.f32 %v1741_v58  ;;  %v500_v49 = vand.u32 2147483647, %v1741_v58  ;;  %1355 = vrcp.f32 %v1754_v44 }
  0x42   :  { %v463_v38 = vsub.f32 1.0, %v462_v20  ;;  %vm467_vm8 = vweird.f32 %v1350_v6  ;;  %v477_v54 = vmul.f32 %v1780_v34, %v1724_v51  ;;  %vm1792_vm9 = vcmp.eq.f32.partialorder %v485_v7, 8.507059e+37 }
  0x43   :  { %v438_v48 = vadd.f32 %v1348_v40, %v437_v8  ;;  %v488_v13 = vor.u32 1.1754944e-38, %v487_v47  ;;  %v502_v53 = vand.u32 2147483648, %v1741_v58  ;;  %v515_v57 = vand.u32 2147483647, %v1754_v44  ;;  %vm1808_vm10 = vmor %vm466_vm3, %vm467_vm8 }
  0x44   :  { %1357 = vrcp.f32 %v1758_v56  ;;  %v1354_v35 = vpop.eup %1353  ;;  %v464_v20 = vmul.f32 %v1350_v6, %v463_v38  ;;  %v478_v33 = vsub.f32 1.0, %v477_v54  ;;  %v517_v61 = vand.u32 2147483648, %v1754_v44 }
  0x45   :  { %v442_v8 = vsel %vm1783_vm6, %v1348_v40, %v438_v48  ;;  %vm482_vm11 = vweird.f32 %v1780_v34  ;;  %v492_v25 = vmul.f32 %v1354_v35, %v1741_v58  ;;  %vm1814_vm12 = vcmp.eq.f32.partialorder %v500_v49, 8.507059e+37 }
  0x46   :  { %v1804_v7 = vsel %vm1749_vm1, %v446_v52, %v442_v8  ;;  %v465_v48 = vadd.f32 %v1350_v6, %v464_v20  ;;  %v479_v63 = vmul.f32 %v1780_v34, %v478_v33  ;;  %vm511_vm13 = vweird.f32 %v1754_v44  ;;  %vm1827_vm0 = vmor %vm481_vm5, %vm482_vm11 }
  0x47   :  { %v450_v36 = vmul.f32 2.0, %v1804_v7  ;;  %v1356_v29 = vpop.eup %1355  ;;  %v493_v52 = vsub.f32 1.0, %v492_v25  ;;  %vm497_vm14 = vweird.f32 %v1354_v35  ;;  %v503_v38 = vor.u32 1.1754944e-38, %v502_v53 }
  0x48   :  { %vm526_vm15 = vweird.f32 %v1758_v56  ;;  %v469_v54 = vsel %vm1808_vm10, %v1350_v6, %v465_v48  ;;  %v480_v49 = vadd.f32 %v1780_v34, %v479_v63  ;;  %vm1831_vm1 = vcmp.eq.f32.partialorder %v515_v57, 8.507059e+37  ;;  %vm1851_vm2 = vmor %vm496_vm7, %vm497_vm14 }
  0x49   :  { %v518_v25 = vor.u32 1.1754944e-38, %v517_v61  ;;  %v494_v53 = vmul.f32 %v1354_v35, %v493_v52  ;;  %v507_v21 = vmul.f32 %v1356_v29, %v1754_v44  ;;  %v530_v47 = vand.u32 2147483647, %v1758_v56 }
  0x4a   :  { %v1358_v20 = vpop.eup %1357  ;;  %v532_v6 = vand.u32 2147483648, %v1758_v56  ;;  %v1839_v48 = vmul.f32 %v450_v36, %v1625_v0  ;;  %v1842_v51 = vmul.f32 %v450_v36, %v1627_v1  ;;  %v1846_v57 = vsel %vm1775_vm4, %v473_v37, %v469_v54 }
  0x4b   :  { %v522_v63 = vmul.f32 %v1358_v20, %v1758_v56  ;;  %v484_v0 = vsel %vm1827_vm0, %v1780_v34, %v480_v49  ;;  %v495_v52 = vadd.f32 %v1354_v35, %v494_v53  ;;  %v508_v1 = vsub.f32 1.0, %v507_v21 }
  0x4c   :  { %vm512_vm3 = vweird.f32 %v1356_v29  ;;  %vm527_vm5 = vweird.f32 %v1358_v20  ;;  %1359 = vrcp.f32 %v1761_v41  ;;  %v545_v24 = vand.u32 2147483647, %v1761_v41 }
  0x4d   :  { %v523_v36 = vsub.f32 1.0, %v522_v63  ;;  %v499_v58 = vsel %vm1851_vm2, %v1354_v35, %v495_v52  ;;  %v509_v37 = vmul.f32 %v1356_v29, %v508_v1  ;;  %v547_v54 = vand.u32 2147483648, %v1761_v41  ;;  %vm1869_vm4 = vmor %vm511_vm13, %vm512_vm3 }
  0x4e   :  { %1361 = vrcp.f32 %v1765_v59  ;;  %v489_v34 = vsel %vm1792_vm9, %v488_v13, %v484_v0  ;;  %vm1873_vm6 = vcmp.eq.f32.partialorder %v530_v47, 8.507059e+37  ;;  %v533_v35 = vor.u32 1.1754944e-38, %v532_v6  ;;  %vm1879_vm7 = vmor %vm526_vm15, %vm527_vm5 }
  0x4f   :  { %v524_v49 = vmul.f32 %v1358_v20, %v523_v36  ;;  %v510_v53 = vadd.f32 %v1356_v29, %v509_v37  ;;  %vm541_vm8 = vweird.f32 %v1761_v41  ;;  %v560_v44 = vand.u32 2147483647, %v1765_v59 }
  0x50   :  { %v562_v4 = vand.u32 2147483648, %v1765_v59  ;;  %v504_v13 = vsel %vm1814_vm12, %v503_v38, %v499_v58  ;;  %vm556_vm9 = vweird.f32 %v1765_v59  ;;  %1363 = vrcp.f32 %v1769_v46 }
  0x51   :  { %v525_v47 = vadd.f32 %v1358_v20, %v524_v49  ;;  %v514_v56 = vsel %vm1869_vm4, %v1356_v29, %v510_v53  ;;  %vm1892_vm10 = vcmp.eq.f32.partialorder %v545_v24, 8.507059e+37  ;;  %v548_v63 = vor.u32 1.1754944e-38, %v547_v54 }
  0x52   :  { %v575_v0 = vand.u32 2147483647, %v1769_v46  ;;  %v577_v52 = vand.u32 2147483648, %v1769_v46  ;;  %v1360_v1 = vpop.eup %1359  ;;  %vm1900_vm11 = vcmp.eq.f32.partialorder %v560_v44, 8.507059e+37  ;;  %v563_v36 = vor.u32 1.1754944e-38, %v562_v4 }
  0x53   :  { %v529_v40 = vsel %vm1879_vm7, %v1358_v20, %v525_v47  ;;  %vm571_vm12 = vweird.f32 %v1769_v46  ;;  %v519_v24 = vsel %vm1831_vm1, %v518_v25, %v514_v56  ;;  %v537_v37 = vmul.f32 %v1360_v1, %v1761_v41 }
  0x54   :  { %v1362_v29 = vpop.eup %1361  ;;  %v534_v58 = vsel %vm1873_vm6, %v533_v35, %v529_v40  ;;  %v581_v54 = vadd.f32 1.0, %v1699_v28  ;;  %vm542_vm13 = vweird.f32 %v1360_v1  ;;  %v582_v21 = vadd.f32 1.0, %v1701_v5 }
  0x55   :  { %v552_v20 = vmul.f32 %v1362_v29, %v1765_v59  ;;  %v583_v49 = vadd.f32 1.0, %v1703_v45  ;;  %v538_v53 = vsub.f32 1.0, %v537_v37  ;;  %vm557_vm14 = vweird.f32 %v1362_v29  ;;  %vm1930_vm0 = vmor %vm541_vm8, %vm542_vm13 }
  0x56   :  { %vm1914_vm15 = vcmp.eq.f32.partialorder %v575_v0, 8.507059e+37  ;;  %v578_v33 = vor.u32 1.1754944e-38, %v577_v52  ;;  %v584_v25 = vadd.f32 1.0, %v1706_v19  ;;  %v1364_v8 = vpop.eup %1363  ;;  %v585_v28 = vadd.f32 1.0, %v1717_v32  ;;  %vm1937_vm2 = vmor %vm556_vm9, %vm557_vm14 }
  0x57   :  { %v553_v35 = vsub.f32 1.0, %v552_v20  ;;  %v586_v44 = vadd.f32 1.0, %v1719_v39  ;;  %v587_v4 = vadd.f32 1.0, %v1721_v42  ;;  %v539_v5 = vmul.f32 %v1360_v1, %v538_v53 }
  0x58   :  { %v567_v45 = vmul.f32 %v1364_v8, %v1769_v46  ;;  %v1924_v47 = vadd.f32 1.0, %v1726_v60  ;;  %v589_v56 = vmul.f32 %v581_v54, %v1846_v57  ;;  %vm572_vm1 = vweird.f32 %v1364_v8 }
  0x59   :  { %v554_v32 = vmul.f32 %v1362_v29, %v553_v35  ;;  %v590_v39 = vmul.f32 %v582_v21, %v489_v34  ;;  %v591_v0 = vmul.f32 %v583_v49, %v504_v13  ;;  %v540_v42 = vadd.f32 %v1360_v1, %v539_v5  ;;  %vm1951_vm3 = vmor %vm571_vm12, %vm572_vm1 }
  0x5a   :  { %v568_v52 = vsub.f32 1.0, %v567_v45  ;;  %v597_v40 = vmul.f32 2.0, %v1846_v57  ;;  %v598_v41 = vmul.f32 2.0, %v489_v34  ;;  %v592_v54 = vmul.f32 %v584_v25, %v519_v24 }
  0x5b   :  { %v555_v37 = vadd.f32 %v1362_v29, %v554_v32  ;;  %v593_v20 = vmul.f32 %v585_v28, %v534_v58  ;;  %v599_v53 = vmul.f32 2.0, %v504_v13  ;;  %v544_v21 = vsel %vm1930_vm0, %v1360_v1, %v540_v42 }
  0x5c   :  { %v569_v49 = vmul.f32 %v1364_v8, %v568_v52  ;;  %v600_v35 = vmul.f32 2.0, %v519_v24  ;;  %v601_v5 = vmul.f32 2.0, %v534_v58  ;;  %v549_v59 = vsel %vm1892_vm10, %v548_v63, %v544_v21 }
  0x5d   :  { %v559_v55 = vsel %vm1937_vm2, %v1362_v29, %v555_v37  ;;  %v605_v34 = vmul.f32 %v597_v40, %v1629_v2  ;;  %v606_v13 = vmul.f32 %v597_v40, %v1631_v3  ;;  %v602_v6 = vmul.f32 2.0, %v549_v59 }
  0x5e   :  { %v564_v1 = vsel %vm1900_vm11, %v563_v36, %v559_v55  ;;  %v570_v24 = vadd.f32 %v1364_v8, %v569_v49  ;;  %v607_v63 = vmul.f32 %v598_v41, %v1641_v9  ;;  %v594_v58 = vmul.f32 %v586_v44, %v549_v59 }
  0x5f   :  { %v595_v29 = vmul.f32 %v587_v4, %v564_v1  ;;  %v603_v25 = vmul.f32 2.0, %v564_v1  ;;  %v608_v46 = vmul.f32 %v598_v41, %v1643_v10  ;;  %v609_v45 = vmul.f32 %v599_v53, %v1645_v11 }
  0x60   :  { %v574_v28 = vsel %vm1951_vm3, %v1364_v8, %v570_v24  ;;  %v610_v2 = vmul.f32 %v599_v53, %v1647_v12  ;;  %v611_v3 = vmul.f32 %v600_v35, %v1649_v14  ;;  %v612_v38 = vmul.f32 %v600_v35, %v1651_v15  ;;  %v2681_v14 = vld [vmem:[#allocation15_spill] sm:$0xff] }
  0x61   :  { %v579_v55 = vsel %vm1914_vm15, %v578_v33, %v574_v28  ;;  %v613_v9 = vmul.f32 %v601_v5, %v1653_v16  ;;  %v614_v36 = vmul.f32 %v601_v5, %v1655_v17  ;;  %v615_v10 = vmul.f32 %v602_v6, %v1657_v18  ;;  %v2682_v33 = vld [vmem:[#allocation16_spill] sm:$0xff] }
  0x62   :  { %v604_v44 = vmul.f32 2.0, %v579_v55  ;;  %v616_v8 = vmul.f32 %v602_v6, %v1663_v22  ;;  %v617_v11 = vmul.f32 %v603_v25, %v1665_v23  ;;  %v618_v12 = vmul.f32 %v603_v25, %v1671_v26 }
  0x63   :  { %vm629_vm5 = vcmask 1041409   ;;  %vm631_vm4 = vcmask 1042434   ;;  %vm633_vm6 = vcmask 1043459   ;;  %vm2639_vm7 = vcmask 1044484  }
  0x64   :  { %v619_v61 = vmul.f32 %v604_v44, %v2681_v14  ;;  %v620_v15 = vmul.f32 %v604_v44, %v2682_v33  ;;  %v630_v16 = vsel %vm629_vm5, %v590_v39, %v589_v56  ;;  %vm2638_vm8 = vcmask 1045509  }
  0x65   :  { %v632_v17 = vsel %vm631_vm4, %v591_v0, %v630_v16  ;;  %vm2637_vm9 = vcmask 1046534   ;;  %v645_v18 = vmul.f32 %v605_v34, %v1839_v48  ;;  %v646_v23 = vmul.f32 %v606_v13, %v1842_v51 }
  0x66   :  { %v634_v22 = vsel %vm633_vm6, %v592_v54, %v632_v17  ;;  %v647_v26 = vmul.f32 %v607_v63, %v1839_v48  ;;  %v648_v4 = vmul.f32 %v608_v46, %v1842_v51  ;;  %v649_v32 = vmul.f32 %v609_v45, %v1839_v48 }
  0x67   :  { %v636_v19 = vsel %vm2639_vm7, %v593_v20, %v634_v22  ;;  %v650_v56 = vmul.f32 %v610_v2, %v1842_v51  ;;  %v651_v39 = vmul.f32 %v611_v3, %v1839_v48  ;;  %v652_v42 = vmul.f32 %v612_v38, %v1842_v51 }
  0x68   :  { %v638_v0 = vsel %vm2638_vm8, %v594_v58, %v636_v19  ;;  %v653_v60 = vmul.f32 %v613_v9, %v1839_v48  ;;  %v654_v52 = vmul.f32 %v614_v36, %v1842_v51  ;;  %v1993_v40 = vadd.f32 1.0, %v1730_v62 }
  0x69   :  { %v655_v41 = vmul.f32 %v615_v10, %v1839_v48  ;;  %v656_v37 = vmul.f32 %v616_v8, %v1842_v51  ;;  %v657_v54 = vmul.f32 %v617_v11, %v1839_v48  ;;  %v1999_v20 = vmul.f32 %v1924_v47, %v579_v55 }
  0x6a   :  { %v658_v53 = vmul.f32 %v618_v12, %v1842_v51  ;;  %v659_v21 = vmul.f32 %v619_v61, %v1839_v48  ;;  %v660_v49 = vmul.f32 %v620_v15, %v1842_v51  ;;  %v640_v35 = vsel %vm2637_vm9, %v595_v29, %v638_v0 }
  0x6b   :  { %v661_v5 = vadd.f32 %v646_v23, %v645_v18  ;;  %v668_v62 = vadd.f32 %v648_v4, %v647_v26  ;;  %v675_v59 = vadd.f32 %v650_v56, %v649_v32  ;;  %v682_v57 = vadd.f32 %v652_v42, %v651_v39 }
  0x6c   :  { %v689_v34 = vadd.f32 %v654_v52, %v653_v60  ;;  %v696_v13 = vadd.f32 %v656_v37, %v655_v41  ;;  %v703_v1 = vadd.f32 %v658_v53, %v657_v54  ;;  %v710_v47 = vadd.f32 %v660_v49, %v659_v21 }
  0x6d   :  { %v662_v24 = vrot.slane %v661_v5, 4  ;;  %v669_v6 = vrot.slane %v668_v62, 4  ;;  %v676_v63 = vrot.slane %v675_v59, 4  ;;  %vm2636_vm10 = vcmask 1047559  }
  0x6e   :  { %v683_v58 = vrot.slane %v682_v57, 4  ;;  %v690_v25 = vrot.slane %v689_v34, 4  ;;  %v697_v46 = vrot.slane %v696_v13, 4  ;;  %v704_v48 = vrot.slane %v703_v1, 4 }
  0x6f   :  { %v663_v28 = vadd.f32 %v662_v24, %v661_v5  ;;  %v670_v51 = vadd.f32 %v669_v6, %v668_v62  ;;  %v677_v45 = vadd.f32 %v676_v63, %v675_v59  ;;  %v711_v29 = vrot.slane %v710_v47, 4 }
  0x70   :  { %v684_v2 = vadd.f32 %v683_v58, %v682_v57  ;;  %v691_v3 = vadd.f32 %v690_v25, %v689_v34  ;;  %v698_v55 = vadd.f32 %v697_v46, %v696_v13  ;;  %v705_v38 = vadd.f32 %v704_v48, %v703_v1  ;;  %v2684_v1 = vld [vmem:[#allocation19_spill] sm:$0xff]  ;;  %v2687_v48 = vld [vmem:[#allocation18_spill] sm:$0xff] }
  0x71   :  { %v664_v9 = vrot.slane %v663_v28, 2  ;;  %v671_v36 = vrot.slane %v670_v51, 2  ;;  %v678_v44 = vrot.slane %v677_v45, 2  ;;  %v712_v10 = vadd.f32 %v711_v29, %v710_v47  ;;  %v2685_v47 = vld [vmem:[#allocation17_spill] sm:$0xff] }
  0x72   :  { %v685_v8 = vrot.slane %v684_v2, 2  ;;  %v692_v11 = vrot.slane %v691_v3, 2  ;;  %v699_v12 = vrot.slane %v698_v55, 2  ;;  %v706_v14 = vrot.slane %v705_v38, 2 }
  0x73   :  { %v665_v61 = vadd.f32 %v664_v9, %v663_v28  ;;  %v672_v33 = vadd.f32 %v671_v36, %v670_v51  ;;  %v679_v15 = vadd.f32 %v678_v44, %v677_v45  ;;  %v713_v16 = vrot.slane %v712_v10, 2 }
  0x74   :  { %v686_v17 = vadd.f32 %v685_v8, %v684_v2  ;;  %v693_v18 = vadd.f32 %v692_v11, %v691_v3  ;;  %v700_v22 = vadd.f32 %v699_v12, %v698_v55  ;;  %v707_v23 = vadd.f32 %v706_v14, %v705_v38 }
  0x75   :  { %v666_v26 = vrot.slane %v665_v61, 1  ;;  %v673_v4 = vrot.slane %v672_v33, 1  ;;  %v680_v19 = vrot.slane %v679_v15, 1  ;;  %v714_v32 = vadd.f32 %v713_v16, %v712_v10 }
  0x76   :  { %v687_v56 = vrot.slane %v686_v17, 1  ;;  %v694_v39 = vrot.slane %v693_v18, 1  ;;  %v701_v0 = vrot.slane %v700_v22, 1  ;;  %v708_v42 = vrot.slane %v707_v23, 1 }
  0x77   :  { %v667_v60 = vadd.f32 %v666_v26, %v665_v61  ;;  %v674_v52 = vadd.f32 %v673_v4, %v672_v33  ;;  %v681_v41 = vadd.f32 %v680_v19, %v679_v15  ;;  %v715_v37 = vrot.slane %v714_v32, 1 }
  0x78   :  { %v2683_v54 = vrot.slane %v1708_v50, 1  ;;  %v449_v21 = vmul.f32 %v1804_v7, %v1744_v27  ;;  %v688_v49 = vadd.f32 %v687_v56, %v686_v17  ;;  %v695_v5 = vadd.f32 %v694_v39, %v693_v18 }
  0x79   :  { %1365 = vrcp.f32 %v1746_v30  ;;  %v642_v62 = vsel %vm2636_vm10, %v1999_v20, %v640_v35  ;;  %v702_v59 = vadd.f32 %v701_v0, %v700_v22  ;;  %v725_v57 = vsel %vm629_vm5, %v674_v52, %v667_v60 }
  0x7a   :  { %v249_v53 = vadd.f32 %v2683_v54, %v1708_v50  ;;  %v2015_v34 = vadd.f32 1.0, %v1734_v31  ;;  %1367 = vrcp.f32 %v1993_v40  ;;  %v709_v13 = vadd.f32 %v708_v42, %v707_v23 }
  0x7b   :  { %v726_v50 = vsel %vm631_vm4, %v681_v41, %v725_v57  ;;  %v269_v7 = vrot.slane %v1738_v43, 1  ;;  %v2021_v24 = vadd.f32 1.0, %v2684_v1  ;;  %v716_v6 = vadd.f32 %v715_v37, %v714_v32 }
  0x7c   :  { %v727_v63 = vsel %vm633_vm6, %v688_v49, %v726_v50  ;;  %v644_v20 = vmul.f32 %v642_v62, %v449_v21  ;;  %v2686_v31 = vrot.slane %v2685_v47, 1  ;;  %v2028_v25 = vadd.f32 1.0, %v249_v53 }
  0x7d   :  { %v728_v35 = vsel %vm2639_vm7, %v695_v5, %v727_v63  ;;  %v2688_v28 = vrot.slane %v2687_v48, 1  ;;  %1369 = vrcp.f32 %v2015_v34  ;;  %v270_v2 = vadd.f32 %v269_v7, %v1738_v43 }
  0x7e   :  { %v256_v58 = vadd.f32 %v2686_v31, %v2685_v47  ;;  %v729_v46 = vsel %vm2638_vm8, %v702_v59, %v728_v35  ;;  %1371 = vrcp.f32 %v2021_v24  ;;  %v306_v33 = vand.u32 2147483647, %v1746_v30 }
  0x7f   :  { %v263_v51 = vadd.f32 %v2688_v28, %v2687_v48  ;;  %v730_v45 = vsel %vm2637_vm9, %v709_v13, %v729_v46  ;;  %v2036_v29 = vpop.eup %1365  ;;  %1373 = vrcp.f32 %v2028_v25  ;;  %v2052_v8 = vadd.f32 1.0, %v270_v2 }
  0x80   :  { %v731_v3 = vsel %vm2636_vm10, %v716_v6, %v730_v45  ;;  %v2041_v55 = vpop.eup %1367  ;;  %v2043_v9 = vadd.f32 1.0, %v256_v58  ;;  %v298_v44 = vmul.f32 %v2036_v29, %v1746_v30  ;;  %v308_v17 = vand.u32 2147483648, %v1746_v30 }
  0x81   :  { %v733_v38 = vsub.f32 %v644_v20, %v731_v3  ;;  %v2046_v36 = vadd.f32 1.0, %v263_v51  ;;  %v313_v43 = vmul.f32 %v2041_v55, %v1993_v40  ;;  %vm302_vm11 = vweird.f32 %v1746_v30 }
  0x82   :  { %1375 = vrcp.f32 %v2043_v9  ;;  %v299_v61 = vsub.f32 1.0, %v298_v44  ;;  %v321_v26 = vand.u32 2147483647, %v1993_v40  ;;  %v323_v4 = vand.u32 2147483648, %v1993_v40 }
  0x83   :  { %v2050_v10 = vmax.f32 %v733_v38, 1.0  ;;  %v2056_v11 = vpop.eup %1369  ;;  %1377 = vrcp.f32 %v2046_v36  ;;  %v314_v18 = vsub.f32 1.0, %v313_v43  ;;  %vm317_vm12 = vweird.f32 %v1993_v40 }
  0x84   :  { %v2060_v14 = vpop.eup %1371  ;;  %v328_v22 = vmul.f32 %v2056_v11, %v2015_v34  ;;  %1379 = vrcp.f32 %v2052_v8  ;;  %v300_v19 = vmul.f32 %v2036_v29, %v299_v61  ;;  %v338_v32 = vand.u32 2147483648, %v2015_v34 }
  0x85   :  { %v735_v12 = vmul.f32 %v2050_v10, %v2050_v10  ;;  %v2067_v16 = vpop.eup %1373  ;;  %v343_v23 = vmul.f32 %v2060_v14, %v2021_v24  ;;  %vm2086_vm13 = vcmp.eq.f32.partialorder %v306_v33, 8.507059e+37  ;;  %v309_v42 = vor.u32 1.1754944e-38, %v308_v17 }
  0x86   :  { %v358_v56 = vmul.f32 %v2067_v16, %v2028_v25  ;;  %v315_v60 = vmul.f32 %v2041_v55, %v314_v18  ;;  %v329_v52 = vsub.f32 1.0, %v328_v22  ;;  %vm303_vm14 = vweird.f32 %v2036_v29 }
  0x87   :  { %v2065_v15 = vadd.f32 -1.0, %v735_v12  ;;  %vm332_vm15 = vweird.f32 %v2015_v34  ;;  %v336_v37 = vand.u32 2147483647, %v2015_v34  ;;  %v344_v54 = vsub.f32 1.0, %v343_v23  ;;  %vm2110_vm3 = vmor %vm302_vm11, %vm303_vm14  ;;  %v1426_v12 = vld [vmem:[#allocation7 + $0x28] sm:$0xff] }
  0x88   :  { %v2084_v39 = vpop.eup %1375  ;;  %vm318_vm0 = vweird.f32 %v2041_v55  ;;  %vm2099_vm1 = vcmp.eq.f32.partialorder %v321_v26, 8.507059e+37  ;;  %v324_v49 = vor.u32 1.1754944e-38, %v323_v4  ;;  %vm347_vm2 = vweird.f32 %v2021_v24 }
  0x89   :  { %1381 = vrsqrt.f32 %v2065_v15  ;;  %v2091_v41 = vpop.eup %1377  ;;  %v301_v62 = vadd.f32 %v2036_v29, %v300_v19  ;;  %v2105_v59 = vor.u32 1.1754944e-38, %v338_v32  ;;  %v351_v57 = vand.u32 2147483647, %v2021_v24  ;;  %vm2121_vm10 = vmor %vm317_vm12, %vm318_vm0 }
  0x8a   :  { %v2096_v53 = vpop.eup %1379  ;;  %v359_v13 = vsub.f32 1.0, %v358_v56  ;;  %v316_v7 = vadd.f32 %v2041_v55, %v315_v60  ;;  %v330_v1 = vmul.f32 %v2056_v11, %v329_v52  ;;  %v373_v6 = vmul.f32 %v2084_v39, %v2043_v9 }
  0x8b   :  { %vm333_vm11 = vweird.f32 %v2056_v11  ;;  %v345_v30 = vmul.f32 %v2060_v14, %v344_v54  ;;  %v353_v35 = vand.u32 2147483648, %v2021_v24  ;;  %v366_v47 = vand.u32 2147483647, %v2028_v25 }
  0x8c   :  { %v368_v31 = vand.u32 2147483648, %v2028_v25  ;;  %v388_v58 = vmul.f32 %v2091_v41, %v2046_v36  ;;  %v403_v40 = vmul.f32 %v2096_v53, %v2052_v8  ;;  %v305_v48 = vsel %vm2110_vm3, %v2036_v29, %v301_v62  ;;  %vm2152_vm3 = vmor %vm332_vm15, %vm333_vm11 }
  0x8d   :  { %vm348_vm12 = vweird.f32 %v2060_v14  ;;  %v360_v28 = vmul.f32 %v2067_v16, %v359_v13  ;;  %vm362_vm14 = vweird.f32 %v2028_v25  ;;  %v320_v51 = vsel %vm2121_vm10, %v2041_v55, %v316_v7  ;;  %v1425_v55 = vld [vmem:[#allocation7 + $0x20] sm:$0xff] }
  0x8e   :  { %v331_v45 = vadd.f32 %v2056_v11, %v330_v1  ;;  %vm2144_vm0 = vcmp.eq.f32.partialorder %v336_v37, 8.507059e+37  ;;  %v374_v3 = vsub.f32 1.0, %v373_v6  ;;  %v346_v44 = vadd.f32 %v2060_v14, %v345_v30  ;;  %vm2164_vm8 = vmor %vm347_vm2, %vm348_vm12 }
  0x8f   :  { %v1382_v5 = vpop.eup %1381  ;;  %vm2157_vm9 = vcmp.eq.f32.partialorder %v351_v57, 8.507059e+37  ;;  %v354_v43 = vor.u32 1.1754944e-38, %v353_v35  ;;  %vm363_vm10 = vweird.f32 %v2067_v16  ;;  %vm2168_vm7 = vcmp.eq.f32.partialorder %v366_v47, 8.507059e+37 }
  0x90   :  { %v738_v63 = vmul.f32 %v1382_v5, %v2065_v15  ;;  %v369_v61 = vor.u32 1.1754944e-38, %v368_v31  ;;  %v389_v33 = vsub.f32 1.0, %v388_v58  ;;  %v404_v17 = vsub.f32 1.0, %v403_v40  ;;  %vm2183_vm2 = vmor %vm362_vm14, %vm363_vm10 }
  0x91   :  { %v310_v22 = vsel %vm2086_vm13, %v309_v42, %v305_v48  ;;  %v325_v23 = vsel %vm2099_vm1, %v324_v49, %v320_v51  ;;  %v361_v24 = vadd.f32 %v2067_v16, %v360_v28  ;;  %vm377_vm15 = vweird.f32 %v2043_v9  ;;  %v1421_v28 = vld [vmem:[#allocation7] sm:$0xff] }
  0x92   :  { %v739_v46 = vmul.f32 %v1382_v5, %v738_v63  ;;  %v335_v26 = vsel %vm2152_vm3, %v2056_v11, %v331_v45  ;;  %v375_v19 = vmul.f32 %v2084_v39, %v374_v3  ;;  %vm378_vm13 = vweird.f32 %v2084_v39  ;;  %v1422_v3 = vld [vmem:[#allocation7 + $0x8] sm:$0xff] }
  0x93   :  { %v350_v56 = vsel %vm2164_vm8, %v2060_v14, %v346_v44  ;;  %v381_v0 = vand.u32 2147483647, %v2043_v9  ;;  %vm744_vm1 = vcmp.eq.f32.partialorder %v2065_v15, inf  ;;  %v747_v11 = vand.u32 2147483648, %v2065_v15  ;;  %vm2213_vm10 = vmor %vm377_vm15, %vm378_vm13  ;;  %v1424_v44 = vld [vmem:[#allocation7 + $0x18] sm:$0xff] }
  0x94   :  { %v740_v38 = vmul.f32 0.5, %v739_v46  ;;  %v390_v25 = vmul.f32 %v2091_v41, %v389_v33  ;;  %v405_v42 = vmul.f32 %v2096_v53, %v404_v17  ;;  %vm746_vm11 = vcmp.eq.f32.partialorder %v2065_v15, 0.0 }
  0x95   :  { %v365_v52 = vsel %vm2183_vm2, %v2067_v16, %v361_v24  ;;  %v383_v14 = vand.u32 2147483648, %v2043_v9  ;;  %vm392_vm8 = vweird.f32 %v2046_v36  ;;  %vm393_vm12 = vweird.f32 %v2091_v41 }
  0x96   :  { %v741_v18 = vsub.f32 1.5, %v740_v38  ;;  %v376_v37 = vadd.f32 %v2084_v39, %v375_v19  ;;  %vm407_vm14 = vweird.f32 %v2052_v8  ;;  %vm408_vm3 = vweird.f32 %v2096_v53  ;;  %vm2221_vm2 = vmor %vm392_vm8, %vm393_vm12  ;;  %v1430_v19 = vld [vmem:[#allocation7 + $0x48] sm:$0xff] }
  0x97   :  { %v396_v21 = vand.u32 2147483647, %v2046_v36  ;;  %v398_v49 = vand.u32 2147483648, %v2046_v36  ;;  %v391_v57 = vadd.f32 %v2091_v41, %v390_v25  ;;  %v411_v9 = vand.u32 2147483647, %v2052_v8  ;;  %vm2235_vm15 = vmor %vm407_vm14, %vm408_vm3  ;;  %v1431_v25 = vld [vmem:[#allocation7 + $0x50] sm:$0xff] }
  0x98   :  { %v742_v32 = vmul.f32 %v1382_v5, %v741_v18  ;;  %v413_v5 = vand.u32 2147483648, %v2052_v8  ;;  %v311_v7 = vmul.f32 2.0, %v310_v22  ;;  %v340_v36 = vsel %vm2144_vm0, %v2105_v59, %v335_v26  ;;  %v1429_v26 = vld [vmem:[#allocation7 + $0x40] sm:$0xff] }
  0x99   :  { %v384_v1 = vor.u32 1.1754944e-38, %v383_v14  ;;  %v355_v63 = vsel %vm2157_vm9, %v354_v43, %v350_v56  ;;  %vm382_vm13 = vcmp.eq.f32.partialorder %v381_v0, 8.507059e+37  ;;  %v326_v20 = vmul.f32 2.0, %v325_v23  ;;  %v1428_v23 = vld [vmem:[#allocation7 + $0x38] sm:$0xff] }
  0x9a   :  { %v743_v60 = vmul.f32 %v2065_v15, %v742_v32  ;;  %v370_v59 = vsel %vm2168_vm7, %v369_v61, %v365_v52  ;;  %v399_v30 = vor.u32 1.1754944e-38, %v398_v49  ;;  %v414_v35 = vor.u32 1.1754944e-38, %v413_v5  ;;  %v1427_v61 = vld [vmem:[#allocation7 + $0x30] sm:$0xff]  ;;  %v1433_v5 = vld [vmem:[#allocation7 + $0x60] sm:$0xff] }
  0x9b   :  { %v395_v8 = vsel %vm2221_vm2, %v2091_v41, %v391_v57  ;;  %vm397_vm0 = vcmp.eq.f32.partialorder %v396_v21, 8.507059e+37  ;;  %vm412_vm9 = vcmp.eq.f32.partialorder %v411_v9, 8.507059e+37  ;;  %v341_v31 = vmul.f32 2.0, %v340_v36  ;;  %v1423_v41 = vld [vmem:[#allocation7 + $0x10] sm:$0xff] }
  0x9c   :  { %v745_v54 = vsel %vm744_vm1, %v2065_v15, %v743_v60  ;;  %v406_v15 = vadd.f32 %v2096_v53, %v405_v42  ;;  %v371_v40 = vmul.f32 2.0, %v370_v59  ;;  %v400_v46 = vsel %vm397_vm0, %v399_v30, %v395_v8 }
  0x9d   :  { %v748_v62 = vsel %vm746_vm11, %v747_v11, %v745_v54  ;;  %v2252_v51 = vmul.f32 %v1421_v28, %v311_v7  ;;  %v2254_v38 = vmul.f32 %v1422_v3, %v311_v7  ;;  %v2256_v29 = vmul.f32 %v1423_v41, %v326_v20 }
  0x9e   :  { %v749_v50 = vadd.f32 %v748_v62, %v2050_v10  ;;  %v380_v10 = vsel %vm2213_vm10, %v2084_v39, %v376_v37  ;;  %v410_v47 = vsel %vm2235_vm15, %v2096_v53, %v406_v15  ;;  %v356_v39 = vmul.f32 2.0, %v355_v63  ;;  %v1432_v37 = vld [vmem:[#allocation7 + $0x58] sm:$0xff] }
  0x9f   :  { %v385_v58 = vsel %vm382_vm13, %v384_v1, %v380_v10  ;;  %v415_v48 = vsel %vm412_vm9, %v414_v35, %v410_v47  ;;  %v2258_v53 = vmul.f32 %v1424_v44, %v326_v20  ;;  %v2260_v43 = vmul.f32 %v1425_v55, %v341_v31  ;;  %v1434_v20 = vld [vmem:[#allocation7 + $0x68] sm:$0xff]  ;;  %v1435_v47 = vld [vmem:[#allocation7 + $0x70] sm:$0xff] }
  0xa0   :  { %1383 = vlog2.f32 %v749_v50  ;;  %v386_v2 = vmul.f32 2.0, %v385_v58  ;;  %v2262_v34 = vmul.f32 %v1426_v12, %v341_v31  ;;  %v2264_v33 = vmul.f32 %v1427_v61, %v356_v39 }
  0xa1   :  { %v401_v18 = vmul.f32 2.0, %v400_v46  ;;  %v416_v22 = vmul.f32 2.0, %v415_v48  ;;  %v2266_v24 = vmul.f32 %v1428_v23, %v356_v39  ;;  %v2268_v4 = vmul.f32 %v1429_v26, %v371_v40 }
  0xa2   :  { %v2270_v32 = vmul.f32 %v1430_v19, %v371_v40  ;;  %v2272_v42 = vmul.f32 %v1431_v25, %v386_v2  ;;  %v2274_v54 = vmul.f32 %v1432_v37, %v386_v2  ;;  %v1436_v2 = vld [vmem:[#allocation7 + $0x78] sm:$0xff]  ;;  %1385 = vrcp.f32 %v1744_v27 }
  0xa3   :  { %v2276_v62 = vmul.f32 %v1433_v5, %v401_v18  ;;  %v2290_v59 = vmul.f32 %v1434_v20, %v401_v18  ;;  %v2294_v31 = vmul.f32 %v1435_v47, %v416_v22  ;;  %v2302_v3 = vmul.f32 %v1436_v2, %v416_v22 }
  0xa6   :  { %v1384_v45 = vpop.eup %1383 }
  0xa7   :  { %v751_v17 = vmul.f32 0.6931472, %v1384_v45 }
  0xa9   :  { %v752_v56 = vmul.f32 0.13696168, %v751_v17  ;;  %v755_v0 = vmul.f32 -0.23021328, %v751_v17  ;;  %v758_v11 = vmul.f32 -0.4590265, %v751_v17 }
  0xaa   :  { %v761_v60 = vmul.f32 -0.48347238, %v751_v17  ;;  %v764_v52 = vmul.f32 0.31327024, %v751_v17  ;;  %v767_v14 = vmul.f32 0.41275558, %v751_v17 }
  0xab   :  { %v753_v16 = vadd.f32 0.04362499, %v752_v56  ;;  %v756_v21 = vadd.f32 0.43507242, %v755_v0  ;;  %v759_v49 = vadd.f32 0.31585357, %v758_v11 }
  0xac   :  { %v762_v57 = vadd.f32 -0.4972615, %v761_v60  ;;  %v765_v13 = vadd.f32 0.35740426, %v764_v52  ;;  %v768_v15 = vadd.f32 -0.46641442, %v767_v14 }
  0xad   :  { %v2278_v9 = vmax.f32 %v753_v16, 0.0  ;;  %v2280_v50 = vmax.f32 %v756_v21, 0.0  ;;  %v2282_v7 = vmax.f32 %v759_v49, 0.0  ;;  %v770_v36 = vmul.f32 0.10663578, %v751_v17 }
  0xae   :  { %v2284_v1 = vmax.f32 %v762_v57, 0.0  ;;  %v2286_v6 = vmax.f32 %v765_v13, 0.0  ;;  %v2288_v63 = vmax.f32 %v768_v15, 0.0  ;;  %v773_v10 = vmul.f32 0.22949655, %v751_v17 }
  0xaf   :  { %v771_v30 = vadd.f32 0.22965544, %v770_v36  ;;  %v776_v35 = vmul.f32 0.3631789, %v2278_v9  ;;  %v777_v8 = vmul.f32 0.041461222, %v2280_v50 }
  0xb0   :  { %v774_v39 = vadd.f32 -0.32434437, %v773_v10  ;;  %v779_v58 = vmul.f32 -0.2002881, %v2282_v7  ;;  %v781_v40 = vmul.f32 -0.07731278, %v2284_v1 }
  0xb1   :  { %v2298_v46 = vmax.f32 %v771_v30, 0.0  ;;  %v778_v48 = vadd.f32 %v777_v8, %v776_v35  ;;  %v783_v28 = vmul.f32 -0.47168034, %v2286_v6  ;;  %v785_v45 = vmul.f32 -0.37571672, %v2288_v63 }
  0xb2   :  { %v2304_v41 = vmax.f32 %v774_v39, 0.0  ;;  %v795_v44 = vmul.f32 0.115385115, %v2278_v9  ;;  %v796_v55 = vmul.f32 -0.11632244, %v2280_v50 }
  0xb3   :  { %v780_v12 = vadd.f32 %v779_v58, %v778_v48  ;;  %v787_v61 = vmul.f32 0.17062442, %v2298_v46  ;;  %v798_v17 = vmul.f32 0.49720994, %v2282_v7  ;;  %v800_v18 = vmul.f32 0.48083535, %v2284_v1 }
  0xb4   :  { %v789_v23 = vmul.f32 0.14718951, %v2304_v41  ;;  %v797_v26 = vadd.f32 %v796_v55, %v795_v44  ;;  %v802_v19 = vmul.f32 0.18554199, %v2286_v6  ;;  %v804_v22 = vmul.f32 0.15045927, %v2288_v63 }
  0xb5   :  { %v782_v56 = vadd.f32 %v781_v40, %v780_v12  ;;  %v806_v0 = vmul.f32 0.18844673, %v2298_v46  ;;  %v808_v11 = vmul.f32 -0.111078575, %v2304_v41  ;;  %v814_v25 = vmul.f32 -0.3649035, %v2278_v9 }
  0xb6   :  { %v799_v60 = vadd.f32 %v798_v17, %v797_v26  ;;  %v815_v52 = vmul.f32 0.22148834, %v2280_v50  ;;  %v817_v14 = vmul.f32 0.025354322, %v2282_v7  ;;  %v819_v37 = vmul.f32 -0.18975812, %v2284_v1 }
  0xb7   :  { %v784_v16 = vadd.f32 %v783_v28, %v782_v56  ;;  %v821_v21 = vmul.f32 -0.0141646415, %v2286_v6  ;;  %v823_v49 = vmul.f32 0.38948783, %v2288_v63  ;;  %v825_v5 = vmul.f32 0.43404353, %v2298_v46 }
  0xb8   :  { %v801_v57 = vadd.f32 %v800_v18, %v799_v60  ;;  %v816_v13 = vadd.f32 %v815_v52, %v814_v25  ;;  %v827_v15 = vmul.f32 -0.1422048, %v2304_v41  ;;  %v833_v36 = vmul.f32 0.07152983, %v2278_v9 }
  0xb9   :  { %v786_v10 = vadd.f32 %v785_v45, %v784_v16  ;;  %v834_v20 = vmul.f32 -0.17813061, %v2280_v50  ;;  %v836_v30 = vmul.f32 0.09430003, %v2282_v7  ;;  %v838_v35 = vmul.f32 -0.16208878, %v2284_v1 }
  0xba   :  { %v803_v8 = vadd.f32 %v802_v19, %v801_v57  ;;  %v818_v47 = vadd.f32 %v817_v14, %v816_v13  ;;  %v840_v39 = vmul.f32 -0.108381, %v2286_v6  ;;  %v842_v58 = vmul.f32 0.39027435, %v2288_v63 }
  0xbb   :  { %v788_v40 = vadd.f32 %v787_v61, %v786_v10  ;;  %v835_v48 = vadd.f32 %v834_v20, %v833_v36  ;;  %v844_v28 = vmul.f32 -0.2728424, %v2298_v46  ;;  %v846_v2 = vmul.f32 0.12318715, %v2304_v41 }
  0xbc   :  { %v805_v44 = vadd.f32 %v804_v22, %v803_v8  ;;  %v820_v45 = vadd.f32 %v819_v37, %v818_v47  ;;  %v852_v55 = vmul.f32 -0.41598466, %v2278_v9  ;;  %v853_v12 = vmul.f32 0.33264413, %v2280_v50 }
  0xbd   :  { %v790_v17 = vadd.f32 %v789_v23, %v788_v40  ;;  %v837_v18 = vadd.f32 %v836_v30, %v835_v48  ;;  %v855_v26 = vmul.f32 0.28709832, %v2282_v7  ;;  %v857_v19 = vmul.f32 -0.26063055, %v2284_v1 }
  0xbe   :  { %v807_v56 = vadd.f32 %v806_v0, %v805_v44  ;;  %v822_v25 = vadd.f32 %v821_v21, %v820_v45  ;;  %v854_v61 = vadd.f32 %v853_v12, %v852_v55  ;;  %v859_v60 = vmul.f32 0.37648425, %v2286_v6 }
  0xbf   :  { %v791_v52 = vadd.f32 0.25772884, %v790_v17  ;;  %v839_v14 = vadd.f32 %v838_v35, %v837_v18  ;;  %v861_v22 = vmul.f32 -0.44143197, %v2288_v63  ;;  %v863_v37 = vmul.f32 -0.16388294, %v2298_v46 }
  0xc0   :  { %v809_v16 = vadd.f32 %v808_v11, %v807_v56  ;;  %v824_v57 = vadd.f32 %v823_v49, %v822_v25  ;;  %v856_v13 = vadd.f32 %v855_v26, %v854_v61  ;;  %v865_v23 = vmul.f32 -0.34972054, %v2304_v41 }
  0xc1   :  { %v792_v36 = vmax.f32 %v791_v52, 0.0  ;;  %v841_v10 = vadd.f32 %v840_v39, %v839_v14  ;;  %v871_v20 = vmul.f32 -0.049660634, %v2278_v9  ;;  %v872_v0 = vmul.f32 0.29632428, %v2280_v50 }
  0xc2   :  { %v810_v21 = vadd.f32 -0.0025773046, %v809_v16  ;;  %v826_v30 = vadd.f32 %v825_v5, %v824_v57  ;;  %v858_v8 = vadd.f32 %v857_v19, %v856_v13  ;;  %v874_v35 = vmul.f32 -0.2693578, %v2282_v7 }
  0xc3   :  { %v793_v47 = vmul.f32 -0.38506737, %v792_v36  ;;  %v843_v40 = vadd.f32 %v842_v58, %v841_v10  ;;  %v873_v48 = vadd.f32 %v872_v0, %v871_v20  ;;  %v876_v11 = vmul.f32 -0.4479787, %v2284_v1 }
  0xc4   :  { %v811_v49 = vmax.f32 %v810_v21, 0.0  ;;  %v828_v44 = vadd.f32 %v827_v15, %v826_v30  ;;  %v860_v45 = vadd.f32 %v859_v60, %v858_v8  ;;  %v878_v55 = vmul.f32 -0.09544816, %v2286_v6 }
  0xc5   :  { %v794_v39 = vadd.f32 -0.351236, %v793_v47  ;;  %v845_v12 = vadd.f32 %v844_v28, %v843_v40  ;;  %v875_v17 = vadd.f32 %v874_v35, %v873_v48  ;;  %v880_v18 = vmul.f32 -0.30148697, %v2288_v63 }
  0xc6   :  { %v812_v26 = vmul.f32 0.22901511, %v811_v49  ;;  %v829_v5 = vadd.f32 0.02931216, %v828_v44  ;;  %v862_v19 = vadd.f32 %v861_v22, %v860_v45  ;;  %v882_v56 = vmul.f32 -0.40924695, %v2298_v46 }
  0xc7   :  { %v847_v25 = vadd.f32 %v846_v2, %v845_v12  ;;  %v877_v58 = vadd.f32 %v876_v11, %v875_v17  ;;  %v884_v61 = vmul.f32 0.08033238, %v2304_v41  ;;  %v890_v52 = vmul.f32 -0.20130387, %v2278_v9 }
  0xc8   :  { %v813_v15 = vadd.f32 %v812_v26, %v794_v39  ;;  %v830_v60 = vmax.f32 %v829_v5, 0.0  ;;  %v864_v14 = vadd.f32 %v863_v37, %v862_v19  ;;  %v891_v16 = vmul.f32 0.17199488, %v2280_v50 }
  0xc9   :  { %v848_v28 = vadd.f32 0.2857857, %v847_v25  ;;  %v879_v57 = vadd.f32 %v878_v55, %v877_v58  ;;  %v893_v13 = vmul.f32 -0.30048457, %v2282_v7  ;;  %v895_v36 = vmul.f32 0.4421131, %v2284_v1 }
  0xca   :  { %v831_v22 = vmul.f32 0.42742392, %v830_v60  ;;  %v866_v10 = vadd.f32 %v865_v23, %v864_v14  ;;  %v892_v20 = vadd.f32 %v891_v16, %v890_v52  ;;  %v897_v2 = vmul.f32 -0.13488983, %v2286_v6 }
  0xcb   :  { %v849_v0 = vmax.f32 %v848_v28, 0.0  ;;  %v881_v21 = vadd.f32 %v880_v18, %v879_v57  ;;  %v899_v30 = vmul.f32 -0.39450473, %v2288_v63  ;;  %v901_v8 = vmul.f32 0.12910815, %v2298_v46 }
  0xcc   :  { %v832_v37 = vadd.f32 %v831_v22, %v813_v15  ;;  %v867_v35 = vadd.f32 -0.08534415, %v866_v10  ;;  %v894_v47 = vadd.f32 %v893_v13, %v892_v20  ;;  %v903_v40 = vmul.f32 0.42715454, %v2304_v41 }
  0xcd   :  { %v850_v48 = vmul.f32 0.4679262, %v849_v0  ;;  %v883_v11 = vadd.f32 %v882_v56, %v881_v21  ;;  %v909_v49 = vmul.f32 -0.059622847, %v2278_v9  ;;  %v910_v23 = vmul.f32 0.4545905, %v2280_v50 }
  0xce   :  { %v868_v44 = vmax.f32 %v867_v35, 0.0  ;;  %v896_v45 = vadd.f32 %v895_v36, %v894_v47  ;;  %v912_v55 = vmul.f32 -0.000104186314, %v2282_v7  ;;  %v914_v39 = vmul.f32 -0.074771374, %v2284_v1 }
  0xcf   :  { %v851_v12 = vadd.f32 %v850_v48, %v832_v37  ;;  %v885_v17 = vadd.f32 %v884_v61, %v883_v11  ;;  %v911_v18 = vadd.f32 %v910_v23, %v909_v49  ;;  %v916_v26 = vmul.f32 0.12021345, %v2286_v6 }
  0xd0   :  { %v869_v5 = vmul.f32 -0.4852937, %v868_v44  ;;  %v898_v19 = vadd.f32 %v897_v2, %v896_v45  ;;  %v918_v25 = vmul.f32 0.4950965, %v2288_v63  ;;  %v920_v56 = vmul.f32 0.44894367, %v2298_v46 }
  0xd1   :  { %v886_v9 = vadd.f32 0.23448357, %v885_v17  ;;  %v913_v58 = vadd.f32 %v912_v55, %v911_v18  ;;  %v922_v50 = vmul.f32 -0.03995486, %v2304_v41  ;;  %v952_v7 = vmul.f32 %v2252_v51, %v2252_v51 }
  0xd2   :  { %v870_v52 = vadd.f32 %v869_v5, %v851_v12  ;;  %v900_v1 = vadd.f32 %v899_v30, %v898_v19  ;;  %v953_v61 = vmul.f32 %v2254_v38, %v2254_v38  ;;  %v954_v6 = vmul.f32 %v2256_v29, %v2256_v29 }
  0xd3   :  { %v887_v15 = vmax.f32 %v886_v9, 0.0  ;;  %v915_v60 = vadd.f32 %v914_v39, %v913_v58  ;;  %v955_v63 = vmul.f32 %v2258_v53, %v2258_v53  ;;  %v956_v46 = vmul.f32 %v2260_v43, %v2260_v43 }
  0xd4   :  { %v902_v41 = vadd.f32 %v901_v8, %v900_v1  ;;  %v957_v14 = vmul.f32 %v2262_v34, %v2262_v34  ;;  %v958_v16 = vmul.f32 %v2264_v33, %v2264_v33  ;;  %v959_v28 = vmul.f32 %v2266_v24, %v2266_v24 }
  0xd5   :  { %v888_v57 = vmul.f32 0.3636401, %v887_v15  ;;  %v917_v13 = vadd.f32 %v916_v26, %v915_v60  ;;  %v960_v36 = vmul.f32 %v2268_v4, %v2268_v4  ;;  %v961_v22 = vmul.f32 %v2270_v32, %v2270_v32 }
  0xd6   :  { %v904_v10 = vadd.f32 %v903_v40, %v902_v41  ;;  %v962_v20 = vmul.f32 %v2272_v42, %v2272_v42  ;;  %v963_v2 = vmul.f32 %v2274_v54, %v2274_v54  ;;  %v964_v0 = vmul.f32 %v2276_v62, %v2276_v62 }
  0xd7   :  { %v889_v21 = vadd.f32 %v888_v57, %v870_v52  ;;  %v919_v30 = vadd.f32 %v918_v25, %v917_v13  ;;  %v965_v8 = vmul.f32 %v2290_v59, %v2290_v59  ;;  %v966_v37 = vmul.f32 %v2294_v31, %v2294_v31 }
  0xd8   :  { %v905_v35 = vadd.f32 0.21114288, %v904_v10  ;;  %v967_v47 = vmul.f32 %v2302_v3, %v2302_v3  ;;  %v968_v40 = vadd.f32 %v953_v61, %v952_v7  ;;  %v975_v48 = vadd.f32 %v955_v63, %v954_v6 }
  0xd9   :  { %v921_v11 = vadd.f32 %v920_v56, %v919_v30  ;;  %v982_v49 = vadd.f32 %v957_v14, %v956_v46  ;;  %v989_v23 = vadd.f32 %v959_v28, %v958_v16  ;;  %v996_v44 = vadd.f32 %v961_v22, %v960_v36 }
  0xda   :  { %v906_v45 = vmax.f32 %v905_v35, 0.0  ;;  %v969_v55 = vrot.slane %v968_v40, 4  ;;  %v976_v39 = vrot.slane %v975_v48, 4  ;;  %v1003_v12 = vadd.f32 %v963_v2, %v962_v20 }
  0xdb   :  { %v923_v17 = vadd.f32 %v922_v50, %v921_v11  ;;  %v983_v18 = vrot.slane %v982_v49, 4  ;;  %v990_v26 = vrot.slane %v989_v23, 4  ;;  %v997_v5 = vrot.slane %v996_v44, 4 }
  0xdc   :  { %v907_v19 = vmul.f32 0.48119503, %v906_v45  ;;  %v970_v25 = vadd.f32 %v969_v55, %v968_v40  ;;  %v977_v9 = vadd.f32 %v976_v39, %v975_v48  ;;  %v1004_v58 = vrot.slane %v1003_v12, 4 }
  0xdd   :  { %v924_v52 = vadd.f32 0.43205968, %v923_v17  ;;  %v984_v1 = vadd.f32 %v983_v18, %v982_v49  ;;  %v991_v7 = vadd.f32 %v990_v26, %v989_v23  ;;  %v998_v61 = vadd.f32 %v997_v5, %v996_v44 }
  0xde   :  { %v908_v56 = vadd.f32 %v907_v19, %v889_v21  ;;  %v971_v6 = vrot.slane %v970_v25, 2  ;;  %v978_v15 = vrot.slane %v977_v9, 2  ;;  %v1005_v60 = vadd.f32 %v1004_v58, %v1003_v12 }
  0xdf   :  { %v925_v63 = vmax.f32 %v924_v52, 0.0  ;;  %v985_v46 = vrot.slane %v984_v1, 2  ;;  %v992_v41 = vrot.slane %v991_v7, 2  ;;  %v999_v14 = vrot.slane %v998_v61, 2 }
  0xe0   :  { %v972_v50 = vadd.f32 %v971_v6, %v970_v25  ;;  %v979_v16 = vadd.f32 %v978_v15, %v977_v9  ;;  %v1006_v28 = vrot.slane %v1005_v60, 2  ;;  %v1010_v57 = vadd.f32 %v965_v8, %v964_v0  ;;  %v2412_v6 = vpop.eup %1385 }
  0xe1   :  { %v926_v13 = vmul.f32 0.45721018, %v925_v63  ;;  %v986_v36 = vadd.f32 %v985_v46, %v984_v1  ;;  %v993_v22 = vadd.f32 %v992_v41, %v991_v7  ;;  %v1000_v10 = vadd.f32 %v999_v14, %v998_v61 }
  0xe2   :  { %v973_v20 = vrot.slane %v972_v50, 1  ;;  %v980_v2 = vrot.slane %v979_v16, 1  ;;  %v1007_v30 = vadd.f32 %v1006_v28, %v1005_v60  ;;  %v1011_v35 = vrot.slane %v1010_v57, 4 }
  0xe3   :  { %v927_v21 = vadd.f32 %v926_v13, %v908_v56  ;;  %v987_v40 = vrot.slane %v986_v36, 1  ;;  %v994_v48 = vrot.slane %v993_v22, 1  ;;  %v1001_v11 = vrot.slane %v1000_v10, 1 }
  0xe4   :  { %v974_v49 = vadd.f32 %v973_v20, %v972_v50  ;;  %v981_v23 = vadd.f32 %v980_v2, %v979_v16  ;;  %v1008_v44 = vrot.slane %v1007_v30, 1  ;;  %v1012_v45 = vadd.f32 %v1011_v35, %v1010_v57 }
  0xe5   :  { %v928_v55 = vsub.f32 0.0, %v927_v21  ;;  %v988_v39 = vadd.f32 %v987_v40, %v986_v36  ;;  %v995_v12 = vadd.f32 %v994_v48, %v993_v22  ;;  %v1002_v0 = vadd.f32 %v1001_v11, %v1000_v10 }
  0xe6   :  { %v1013_v8 = vrot.slane %v1012_v45, 2  ;;  %v1017_v17 = vadd.f32 %v967_v47, %v966_v37  ;;  %v2396_v18 = vsub.f32 1.0, %v974_v49  ;;  %v2399_v5 = vsub.f32 1.0, %v981_v23 }
  0xe7   :  { %v929_v26 = vmul.f32 1.442695, %v928_v55  ;;  %v1009_v19 = vadd.f32 %v1008_v44, %v1007_v30  ;;  %v2401_v58 = vsub.f32 1.0, %v988_v39  ;;  %v2403_v52 = vsub.f32 1.0, %v995_v12 }
  0xe8   :  { %v1014_v25 = vadd.f32 %v1013_v8, %v1012_v45  ;;  %v1018_v9 = vrot.slane %v1017_v17, 4  ;;  %v2405_v61 = vsub.f32 1.0, %v1002_v0  ;;  %v2432_v57 = vmul.f32 %v2412_v6, %v1744_v27 }
  0xe9   :  { %1387 = vpow2.f32 %v929_v26  ;;  %v2409_v56 = vsub.f32 1.0, %v1009_v19  ;;  %vm1038_vm7 = vweird.f32 %v2396_v18  ;;  %vm1048_vm1 = vweird.f32 %v2399_v5 }
  0xea   :  { %v1015_v1 = vrot.slane %v1014_v25, 1  ;;  %v1019_v7 = vadd.f32 %v1018_v9, %v1017_v17  ;;  %1389 = vrsqrt.f32 %v2396_v18  ;;  %vm1058_vm11 = vweird.f32 %v2401_v58 }
  0xeb   :  { %1391 = vrsqrt.f32 %v2399_v5  ;;  %vm1068_vm8 = vweird.f32 %v2403_v52  ;;  %vm1078_vm3 = vweird.f32 %v2405_v61 }
  0xec   :  { %v1016_v37 = vadd.f32 %v1015_v1, %v1014_v25  ;;  %v1020_v47 = vrot.slane %v1019_v7, 2  ;;  %1393 = vrsqrt.f32 %v2401_v58 }
  0xed   :  { %1395 = vrsqrt.f32 %v2403_v52 }
  0xee   :  { %v1021_v15 = vadd.f32 %v1020_v47, %v1019_v7  ;;  %v2415_v60 = vsub.f32 1.0, %v1016_v37  ;;  %1397 = vrsqrt.f32 %v2405_v61 }
  0xef   :  { %v1388_v63 = vpop.eup %1387  ;;  %1399 = vrsqrt.f32 %v2409_v56 }
  0xf0   :  { %v2418_v46 = vpop.eup %1389  ;;  %v2420_v41 = vadd.f32 1.0, %v1388_v63  ;;  %v1022_v14 = vrot.slane %v1021_v15, 1  ;;  %1401 = vrsqrt.f32 %v2415_v60 }
  0xf1   :  { %v2423_v50 = vpop.eup %1391  ;;  %v1033_v16 = vmul.f32 %v2418_v46, %v2396_v18  ;;  %vm1039_vm12 = vweird.f32 %v2418_v46 }
  0xf2   :  { %v2428_v28 = vpop.eup %1393  ;;  %v932_v13 = vmul.f32 1e-06, %v2420_v41  ;;  %v1043_v36 = vmul.f32 %v2423_v50, %v2399_v5  ;;  %v1023_v35 = vadd.f32 %v1022_v14, %v1021_v15  ;;  %vm1049_vm14 = vweird.f32 %v2423_v50  ;;  %vm2473_vm15 = vmor %vm1038_vm7, %vm1039_vm12 }
  0xf3   :  { %v2438_v22 = vpop.eup %1395  ;;  %v1034_v10 = vmul.f32 %v2418_v46, %v1033_v16  ;;  %v1053_v20 = vmul.f32 %v2428_v28, %v2401_v58  ;;  %vm1059_vm10 = vweird.f32 %v2428_v28  ;;  %vm2482_vm0 = vmor %vm1048_vm1, %vm1049_vm14 }
  0xf4   :  { %v2445_v2 = vpop.eup %1397  ;;  %v2447_v30 = vadd.f32 1.0, %v932_v13  ;;  %v1044_v21 = vmul.f32 %v2423_v50, %v1043_v36  ;;  %v1063_v40 = vmul.f32 %v2438_v22, %v2403_v52  ;;  %v2465_v0 = vsub.f32 1.0, %v1023_v35  ;;  %vm2497_vm9 = vmor %vm1058_vm11, %vm1059_vm10 }
  0xf5   :  { %v1035_v48 = vmul.f32 0.5, %v1034_v10  ;;  %v1054_v11 = vmul.f32 %v2428_v28, %v1053_v20  ;;  %v1073_v49 = vmul.f32 %v2445_v2, %v2405_v61  ;;  %v2456_v23 = vpop.eup %1399  ;;  %vm1069_vm2 = vweird.f32 %v2438_v22 }
  0xf6   :  { %1403 = vrcp.f32 %v2447_v30  ;;  %v2462_v44 = vpop.eup %1401  ;;  %v1045_v55 = vmul.f32 0.5, %v1044_v21  ;;  %v1064_v12 = vmul.f32 %v2438_v22, %v1063_v40  ;;  %vm939_vm13 = vweird.f32 %v2447_v30  ;;  %vm2520_vm11 = vmor %vm1068_vm8, %vm1069_vm2 }
  0xf7   :  { %v1036_v45 = vsub.f32 1.5, %v1035_v48  ;;  %v1055_v39 = vmul.f32 0.5, %v1054_v11  ;;  %v1074_v8 = vmul.f32 %v2445_v2, %v1073_v49  ;;  %v1083_v18 = vmul.f32 %v2456_v23, %v2409_v56 }
  0xf8   :  { %v1046_v19 = vsub.f32 1.5, %v1045_v55  ;;  %v1065_v9 = vmul.f32 0.5, %v1064_v12  ;;  %v1093_v37 = vmul.f32 %v2462_v44, %v2415_v60  ;;  %v943_v47 = vand.u32 2147483647, %v2447_v30 }
  0xf9   :  { %v1037_v17 = vmul.f32 %v2418_v46, %v1036_v45  ;;  %v1056_v25 = vsub.f32 1.5, %v1055_v39  ;;  %v1075_v7 = vmul.f32 0.5, %v1074_v8  ;;  %v945_v13 = vand.u32 2147483648, %v2447_v30 }
  0xfa   :  { %v1047_v15 = vmul.f32 %v2423_v50, %v1046_v19  ;;  %v1066_v14 = vsub.f32 1.5, %v1065_v9  ;;  %v1084_v10 = vmul.f32 %v2456_v23, %v1083_v18  ;;  %v1094_v20 = vmul.f32 %v2462_v44, %v1093_v37 }
  0xfb   :  { %v1057_v63 = vmul.f32 %v2428_v28, %v1056_v25  ;;  %v1041_v36 = vsel %vm2473_vm15, %v2418_v46, %v1037_v17  ;;  %v1076_v21 = vsub.f32 1.5, %v1075_v7  ;;  %vm1079_vm7 = vweird.f32 %v2445_v2 }
  0xfc   :  { %v1404_v16 = vpop.eup %1403  ;;  %v1051_v58 = vsel %vm2482_vm0, %v2423_v50, %v1047_v15  ;;  %v1067_v46 = vmul.f32 %v2438_v22, %v1066_v14  ;;  %v1085_v48 = vmul.f32 0.5, %v1084_v10  ;;  %v1095_v50 = vmul.f32 0.5, %v1094_v20  ;;  %vm2530_vm12 = vmor %vm1078_vm3, %vm1079_vm7 }
  0xfd   :  { %v935_v35 = vmul.f32 %v1404_v16, %v2447_v30  ;;  %vm940_vm1 = vweird.f32 %v1404_v16  ;;  %v1061_v40 = vsel %vm2497_vm9, %v2428_v28, %v1057_v63  ;;  %1405 = vrsqrt.f32 %v2465_v0 }
  0xfe   :  { %v1120_v45 = vsel %vm629_vm5, %v1051_v58, %v1041_v36  ;;  %v1086_v55 = vsub.f32 1.5, %v1085_v48  ;;  %v274_v28 = vsub.f32 1.0, %v2432_v57  ;;  %v1077_v12 = vmul.f32 %v2445_v2, %v1076_v21  ;;  %vm2538_vm14 = vmor %vm939_vm13, %vm940_vm1 }
  0xff   :  { %v936_v11 = vsub.f32 1.0, %v935_v35  ;;  %vm1088_vm8 = vweird.f32 %v2409_v56  ;;  %v946_v17 = vor.u32 1.1754944e-38, %v945_v13  ;;  %v1071_v57 = vsel %vm2520_vm11, %v2438_v22, %v1067_v46 }
 0x100   :  { %vm1089_vm5 = vweird.f32 %v2456_v23  ;;  %v1121_v61 = vsel %vm631_vm4, %v1061_v40, %v1120_v45  ;;  %vm944_vm3 = vcmp.eq.f32.partialorder %v943_v47, 8.507059e+37  ;;  %v1096_v19 = vsub.f32 1.5, %v1095_v50  ;;  %v117_v40 = vld [vmem:[#allocation8] sm:$0xff] }
 0x101   :  { %v937_v39 = vmul.f32 %v1404_v16, %v936_v11  ;;  %v1087_v56 = vmul.f32 %v2456_v23, %v1086_v55  ;;  %vm1098_vm10 = vweird.f32 %v2415_v60  ;;  %v1081_v9 = vsel %vm2530_vm12, %v2445_v2, %v1077_v12  ;;  %vm2554_vm2 = vmor %vm1088_vm8, %vm1089_vm5  ;;  %v1437_v12 = vld [vmem:[#allocation2] sm:$0xff] }
 0x102   :  { %vm1099_vm4 = vweird.f32 %v2462_v44  ;;  %v1122_v1 = vsel %vm633_vm6, %v1071_v57, %v1121_v61  ;;  %v275_v7 = vmul.f32 %v2412_v6, %v274_v28  ;;  %vm277_vm15 = vweird.f32 %v1744_v27 }
 0x103   :  { %v938_v26 = vadd.f32 %v1404_v16, %v937_v39  ;;  %v1406_v30 = vpop.eup %1405  ;;  %v1097_v15 = vmul.f32 %v2462_v44, %v1096_v19  ;;  %vm278_vm13 = vweird.f32 %v2412_v6  ;;  %v1091_v2 = vsel %vm2554_vm2, %v2456_v23, %v1087_v56  ;;  %vm2571_vm6 = vmor %vm1098_vm10, %vm1099_vm4  ;;  %v1438_v19 = vld [vmem:[#allocation2 + $0x8] sm:$0xff] }
 0x104   :  { %v1103_v37 = vmul.f32 %v1406_v30, %v2465_v0  ;;  %vm2731_vm0 = vcmask 1044484   ;;  %v276_v36 = vadd.f32 %v2412_v6, %v275_v7  ;;  %vm1108_vm9 = vweird.f32 %v2465_v0  ;;  %vm279_vm1 = vmor %vm277_vm15, %vm278_vm13 }
 0x105   :  { %v942_v25 = vsel %vm2538_vm14, %v1404_v16, %v938_v26  ;;  %v1123_v14 = vsel %vm2731_vm0, %v1081_v9, %v1122_v1  ;;  %v281_v16 = vand.u32 2147483647, %v1744_v27  ;;  %vm1109_vm7 = vweird.f32 %v1406_v30 }
 0x106   :  { %v947_v18 = vsel %vm944_vm3, %v946_v17, %v942_v25  ;;  %v1104_v5 = vmul.f32 %v1406_v30, %v1103_v37  ;;  %v1101_v60 = vsel %vm2571_vm6, %v2462_v44, %v1097_v15  ;;  %vm2732_vm11 = vcmask 1045509   ;;  %vm1110_vm12 = vmor %vm1108_vm9, %vm1109_vm7 }
 0x107   :  { %v948_v47 = vmul.f32 %v947_v18, %v2420_v41  ;;  %v283_v41 = vand.u32 2147483648, %v1744_v27  ;;  %v1124_v23 = vsel %vm2732_vm11, %v1091_v2, %v1123_v14  ;;  %v280_v58 = vsel %vm279_vm1, %v2412_v6, %v276_v36 }
 0x108   :  { %v1105_v10 = vmul.f32 0.5, %v1104_v5  ;;  %vm282_vm8 = vcmp.eq.f32.partialorder %v281_v16, 8.507059e+37  ;;  %vm2733_vm14 = vcmask 1046534   ;;  %vm2734_vm5 = vcmask 1047559  }
 0x109   :  { %v949_v13 = vmul.f32 1.442695, %v948_v47  ;;  %v284_v35 = vor.u32 1.1754944e-38, %v283_v41  ;;  %v1125_v0 = vsel %vm2733_vm14, %v1101_v60, %v1124_v23 }
 0x10a   :  { %v1106_v20 = vsub.f32 1.5, %v1105_v10 }
 0x10b   :  { %1407 = vpow2.f32 %v949_v13  ;;  %v285_v48 = vsel %vm282_vm8, %v284_v35, %v280_v58 }
 0x10c   :  { %v1107_v21 = vmul.f32 %v1406_v30, %v1106_v20  ;;  %v286_v50 = vmul.f32 2.0, %v285_v48 }
 0x10e   :  { %v1111_v46 = vsel %vm1110_vm12, %v1406_v30, %v1107_v21  ;;  %v2589_v8 = vmul.f32 %v1437_v12, %v286_v50  ;;  %v2592_v56 = vmul.f32 %v1438_v19, %v286_v50 }
 0x10f   :  { %v1126_v11 = vsel %vm2734_vm5, %v1111_v46, %v1125_v0 }
 0x111   :  { %v1408_v27 = vpop.eup %1407 }
 0x112   :  { %v951_v49 = vmul.f32 %v1408_v27, %v117_v40 }
 0x114   :  { %v1128_v44 = vmul.f32 %v1126_v11, %v951_v49 }
 0x116   :  { %v1130_v45 = vrot.slane %v1128_v44, 1  ;;  %v1131_v55 = vrot.slane %v1128_v44, 2  ;;  %v1132_v28 = vrot.slane %v1128_v44, 3  ;;  %v1137_v39 = vperm.slane %v1128_v44, 0 }
 0x117   :  { %v1133_v17 = vrot.slane %v1128_v44, 4  ;;  %v1134_v57 = vrot.slane %v1128_v44, 5  ;;  %v1135_v22 = vrot.slane %v1128_v44, 6  ;;  %v1136_v18 = vrot.slane %v1128_v44, 7 }
 0x118   :  { %v1138_v6 = vperm.slane %v1130_v45, 0  ;;  %v1139_v52 = vperm.slane %v1131_v55, 0  ;;  %v1140_v61 = vperm.slane %v1132_v28, 0  ;;  %v1153_v26 = vmul.f32 %v1137_v39, %v2252_v51 }
 0x119   :  { %v1154_v30 = vmul.f32 %v1137_v39, %v2254_v38  ;;  %v1141_v1 = vperm.slane %v1133_v17, 0  ;;  %v1142_v47 = vperm.slane %v1134_v57, 0  ;;  %v1184_v5 = vadd.f32 %v1133_v17, %v1128_v44  ;;  %v1346_v17 = vld [vmem:[%s2627_s3] ss:$0 sm:$0xff]  ;;  %s1573_s3 = smov [#allocation10]  }
 0x11a   :  { %v1155_v25 = vmul.f32 %v1138_v6, %v2256_v29  ;;  %v1156_v9 = vmul.f32 %v1138_v6, %v2258_v53  ;;  %v1157_v7 = vmul.f32 %v1139_v52, %v2260_v43  ;;  %v1158_v37 = vmul.f32 %v1139_v52, %v2262_v34  ;;  %s1321_s13 = sshll.u32 %s1573_s3, 4  ;;  %s1322_s13 = int_to_ptr.vmem [resolvable:$true] %s1321_s13 }
 0x11b   :  { %v1159_v15 = vmul.f32 %v1140_v61, %v2264_v33  ;;  %v1160_v51 = vmul.f32 %v1140_v61, %v2266_v24  ;;  %v1210_v38 = vmul.f32 %v2589_v8, %v2589_v8  ;;  %v1211_v29 = vmul.f32 %v2592_v56, %v2592_v56 }
 0x11c   :  { %v1169_v2 = vadd.f32 %v1155_v25, %v1153_v26  ;;  %v1176_v63 = vadd.f32 %v1156_v9, %v1154_v30  ;;  %v1143_v53 = vperm.slane %v1135_v22, 0  ;;  %v1161_v43 = vmul.f32 %v1141_v1, %v2268_v4 }
 0x11d   :  { %v1162_v34 = vmul.f32 %v1141_v1, %v2270_v32  ;;  %v1185_v41 = vrot.slane %v1184_v5, 2  ;;  %v1212_v33 = vadd.f32 %v1211_v29, %v1210_v38  ;;  %v1144_v13 = vperm.slane %v1136_v18, 0 }
 0x11e   :  { %v1170_v14 = vadd.f32 %v1169_v2, %v1157_v7  ;;  %v1177_v16 = vadd.f32 %v1176_v63, %v1158_v37  ;;  %v1163_v24 = vmul.f32 %v1142_v47, %v2272_v42  ;;  %v1164_v10 = vmul.f32 %v1142_v47, %v2274_v54 }
 0x11f   :  { %v1186_v23 = vadd.f32 %v1185_v41, %v1184_v5  ;;  %v1165_v20 = vmul.f32 %v1143_v53, %v2276_v62  ;;  %v1213_v58 = vrot.slane %v1212_v33, 4  ;;  %v1166_v4 = vmul.f32 %v1143_v53, %v2290_v59 }
 0x120   :  { %v1171_v36 = vadd.f32 %v1170_v14, %v1159_v15  ;;  %v1178_v60 = vadd.f32 %v1177_v16, %v1160_v51  ;;  %v1167_v32 = vmul.f32 %v1144_v13, %v2294_v31  ;;  %v1168_v46 = vmul.f32 %v1144_v13, %v2302_v3 }
 0x121   :  { %v1187_v0 = vrot.slane %v1186_v23, 1  ;;  %v1214_v11 = vadd.f32 %v1213_v58, %v1212_v33 }
 0x122   :  { %v1172_v35 = vadd.f32 %v1171_v36, %v1161_v43  ;;  %v1179_v21 = vadd.f32 %v1178_v60, %v1162_v34 }
 0x123   :  { %v1188_v42 = vadd.f32 %v1187_v0, %v1186_v23  ;;  %v1215_v62 = vrot.slane %v1214_v11, 2 }
 0x124   :  { %v1173_v40 = vadd.f32 %v1172_v35, %v1163_v24  ;;  %v1180_v27 = vadd.f32 %v1179_v21, %v1164_v10 }
 0x125   :  { %1409 = vrcp.f32 %v1188_v42  ;;  %v1216_v55 = vadd.f32 %v1215_v62, %v1214_v11  ;;  %v1200_v59 = vand.u32 2147483648, %v1188_v42  ;;  %vm1194_vm3 = vweird.f32 %v1188_v42 }
 0x126   :  { %v1174_v48 = vadd.f32 %v1173_v40, %v1165_v20  ;;  %v1181_v54 = vadd.f32 %v1180_v27, %v1166_v4  ;;  %v1198_v31 = vand.u32 2147483647, %v1188_v42 }
 0x127   :  { %v1217_v12 = vrot.slane %v1216_v55, 1  ;;  %v1201_v3 = vor.u32 1.1754944e-38, %v1200_v59 }
 0x128   :  { %v1175_v49 = vadd.f32 %v1174_v48, %v1167_v32  ;;  %v1182_v50 = vadd.f32 %v1181_v54, %v1168_v46  ;;  %vm1199_vm4 = vcmp.eq.f32.partialorder %v1198_v31, 8.507059e+37 }
 0x129   :  { %v1218_v57 = vadd.f32 %v1217_v12, %v1216_v55 }
 0x12b   :  { %v1410_v44 = vpop.eup %1409  ;;  %v1219_v9 = vsub.f32 1.0, %v1218_v57 }
 0x12c   :  { %v1190_v45 = vmul.f32 %v1410_v44, %v1188_v42  ;;  %vm1195_vm10 = vweird.f32 %v1410_v44 }
 0x12d   :  { %vm1196_vm2 = vmor %vm1194_vm3, %vm1195_vm10  ;;  %1411 = vrsqrt.f32 %v1219_v9  ;;  %vm1226_vm15 = vweird.f32 %v1219_v9 }
 0x12e   :  { %v1191_v28 = vsub.f32 1.0, %v1190_v45 }
 0x130   :  { %v1192_v39 = vmul.f32 %v1410_v44, %v1191_v28 }
 0x132   :  { %v1193_v6 = vadd.f32 %v1410_v44, %v1192_v39 }
 0x133   :  { %v1412_v47 = vpop.eup %1411 }
 0x134   :  { %v1197_v52 = vsel %vm1196_vm2, %v1410_v44, %v1193_v6  ;;  %v1221_v2 = vmul.f32 %v1412_v47, %v1219_v9  ;;  %vm1227_vm13 = vweird.f32 %v1412_v47 }
 0x135   :  { %v1202_v61 = vsel %vm1199_vm4, %v1201_v3, %v1197_v52  ;;  %vm1228_vm6 = vmor %vm1226_vm15, %vm1227_vm13 }
 0x136   :  { %v1203_v26 = vmul.f32 %v1202_v61, %v1175_v49  ;;  %v1204_v19 = vmul.f32 %v1202_v61, %v1182_v50  ;;  %v1222_v38 = vmul.f32 %v1412_v47, %v1221_v2 }
 0x138   :  { %v1208_v30 = vmul.f32 %v1346_v17, %v1203_v26  ;;  %v1209_v25 = vmul.f32 %v1346_v17, %v1204_v19  ;;  %v1223_v53 = vmul.f32 0.5, %v1222_v38 }
 0x13a   :  { %v1230_v22 = vmul.f32 %v1208_v30, %v1208_v30  ;;  %v1231_v1 = vmul.f32 %v1209_v25, %v1209_v25  ;;  %v1224_v43 = vsub.f32 1.5, %v1223_v53 }
 0x13c   :  { %v1232_v7 = vadd.f32 %v1231_v1, %v1230_v22  ;;  %v1225_v16 = vmul.f32 %v1412_v47, %v1224_v43 }
 0x13e   :  { %v1233_v18 = vrot.slane %v1232_v7, 4  ;;  %v1229_v13 = vsel %vm1228_vm6, %v1412_v47, %v1225_v16 }
 0x13f   :  { %v1250_v10 = vmul.f32 0.97262883, %v1229_v13 }
 0x140   :  { %v1234_v37 = vadd.f32 %v1233_v18, %v1232_v7 }
 0x141   :  { %v1252_v20 = vmul.f32 %v1250_v10, %v2589_v8  ;;  %v1253_v35 = vmul.f32 %v1250_v10, %v2592_v56 }
 0x142   :  { %v1235_v15 = vrot.slane %v1234_v37, 2 }
 0x144   :  { %v1236_v51 = vadd.f32 %v1235_v15, %v1234_v37 }
 0x146   :  { %v1237_v63 = vrot.slane %v1236_v51, 1 }
 0x148   :  { %v1238_v5 = vadd.f32 %v1237_v63, %v1236_v51 }
 0x14a   :  { %v1239_v29 = vsub.f32 1.0, %v1238_v5 }
 0x14c   :  { %1413 = vrsqrt.f32 %v1239_v29  ;;  %vm1246_vm0 = vweird.f32 %v1239_v29 }
 0x152   :  { %v1414_v14 = vpop.eup %1413 }
 0x153   :  { %v1241_v34 = vmul.f32 %v1414_v14, %v1239_v29  ;;  %vm1247_vm9 = vweird.f32 %v1414_v14 }
 0x154   :  { %vm1248_vm7 = vmor %vm1246_vm0, %vm1247_vm9 }
 0x155   :  { %v1242_v41 = vmul.f32 %v1414_v14, %v1241_v34 }
 0x157   :  { %v1243_v33 = vmul.f32 0.5, %v1242_v41 }
 0x159   :  { %v1244_v24 = vsub.f32 1.5, %v1243_v33 }
 0x15b   :  { %v1245_v36 = vmul.f32 %v1414_v14, %v1244_v24 }
 0x15d   :  { %v1249_v60 = vsel %vm1248_vm7, %v1414_v14, %v1245_v36 }
 0x15e   :  { %v1251_v23 = vmul.f32 0.027371187, %v1249_v60 }
 0x160   :  { %v1254_v58 = vmul.f32 %v1251_v23, %v1208_v30  ;;  %v1255_v4 = vmul.f32 %v1251_v23, %v1209_v25  ;;  %v1258_v21 = vadd.f32 %v1251_v23, %v1250_v10 }
 0x162   :  { %v1256_v0 = vadd.f32 %v1254_v58, %v1252_v20  ;;  %v1257_v32 = vadd.f32 %v1255_v4, %v1253_v35  ;;  %1415 = vrcp.f32 %v1258_v21  ;;  %v1270_v27 = vand.u32 2147483648, %v1258_v21 }
 0x163   :  { %vm1264_vm1 = vweird.f32 %v1258_v21  ;;  %v1268_v48 = vand.u32 2147483647, %v1258_v21 }
 0x164   :  { %v1271_v54 = vor.u32 1.1754944e-38, %v1270_v27 }
 0x165   :  { %vm1269_vm8 = vcmp.eq.f32.partialorder %v1268_v48, 8.507059e+37 }
 0x168   :  { %v1416_v40 = vpop.eup %1415 }
 0x169   :  { %v1260_v46 = vmul.f32 %v1416_v40, %v1258_v21  ;;  %vm1265_vm11 = vweird.f32 %v1416_v40 }
 0x16a   :  { %vm1266_vm12 = vmor %vm1264_vm1, %vm1265_vm11 }
 0x16b   :  { %v1261_v42 = vsub.f32 1.0, %v1260_v46 }
 0x16d   :  { %v1262_v11 = vmul.f32 %v1416_v40, %v1261_v42 }
 0x16f   :  { %v1263_v49 = vadd.f32 %v1416_v40, %v1262_v11 }
 0x171   :  { %v1267_v8 = vsel %vm1266_vm12, %v1416_v40, %v1263_v49 }
 0x172   :  { %v1272_v56 = vsel %vm1269_vm8, %v1271_v54, %v1267_v8 }
 0x173   :  { %v1273_v50 = vmul.f32 %v1272_v56, %v1256_v0  ;;  %v1274_v62 = vmul.f32 %v1272_v56, %v1257_v32 }
 0x175   :  { %v1275_v44 = vmul.f32 %v1273_v50, %v1273_v50  ;;  %v1276_v45 = vmul.f32 %v1274_v62, %v1274_v62 }
 0x177   :  { %v1277_v55 = vadd.f32 %v1276_v45, %v1275_v44 }
 0x179   :  { %v1278_v59 = vrot.slane %v1277_v55, 4 }
 0x17b   :  { %v1279_v28 = vadd.f32 %v1278_v59, %v1277_v55 }
 0x17d   :  { %v1280_v31 = vrot.slane %v1279_v28, 2 }
 0x17f   :  { %v1281_v39 = vadd.f32 %v1280_v31, %v1279_v28 }
 0x181   :  { %v1282_v12 = vrot.slane %v1281_v39, 1 }
 0x183   :  { %v1283_v3 = vadd.f32 %v1282_v12, %v1281_v39 }
 0x185   :  { %v1284_v6 = vsub.f32 1.0, %v1283_v3 }
 0x187   :  { %v1285_v52 = vmax.f32 %v1284_v6, 0.0 }
 0x189   :  { %1417 = vrsqrt.f32 %v1285_v52  ;;  %vm1293_vm14 = vcmp.eq.f32.partialorder %v1285_v52, inf  ;;  %v1296_v25 = vand.u32 2147483648, %v1285_v52  ;;  %vm1295_vm5 = vcmp.eq.f32.partialorder %v1285_v52, 0.0 }
 0x18f   :  { %v1418_v17 = vpop.eup %1417 }
 0x190   :  { %v1287_v57 = vmul.f32 %v1418_v17, %v1285_v52 }
 0x192   :  { %v1288_v61 = vmul.f32 %v1418_v17, %v1287_v57 }
 0x194   :  { %v1289_v26 = vmul.f32 0.5, %v1288_v61 }
 0x196   :  { %v1290_v19 = vsub.f32 1.5, %v1289_v26 }
 0x198   :  { %v1291_v30 = vmul.f32 %v1418_v17, %v1290_v19 }
 0x19a   :  { %v1292_v9 = vmul.f32 %v1291_v30, %v1285_v52 }
 0x19c   :  { %v1294_v22 = vsel %vm1293_vm14, %v1285_v52, %v1292_v9 }
 0x19d   :  { %v1297_v1 = vsel %vm1295_vm5, %v1296_v25, %v1294_v22 }
 0x19e   :  { %v1298_v7 = vadd.f32 1.0, %v1297_v1 }
 0x1a0   :  { %1419 = vrcp.f32 %v1298_v7  ;;  %v1310_v47 = vand.u32 2147483648, %v1298_v7  ;;  %vm1304_vm3 = vweird.f32 %v1298_v7  ;;  %v1308_v51 = vand.u32 2147483647, %v1298_v7 }
 0x1a2   :  { %v1311_v63 = vor.u32 1.1754944e-38, %v1310_v47  ;;  %vm1309_vm4 = vcmp.eq.f32.partialorder %v1308_v51, 8.507059e+37 }
 0x1a6   :  { %v1420_v18 = vpop.eup %1419 }
 0x1a7   :  { %v1300_v37 = vmul.f32 %v1420_v18, %v1298_v7  ;;  %vm1305_vm10 = vweird.f32 %v1420_v18 }
 0x1a8   :  { %vm1306_vm2 = vmor %vm1304_vm3, %vm1305_vm10 }
 0x1a9   :  { %v1301_v15 = vsub.f32 1.0, %v1300_v37 }
 0x1ab   :  { %v1302_v2 = vmul.f32 %v1420_v18, %v1301_v15 }
 0x1ad   :  { %v1303_v5 = vadd.f32 %v1420_v18, %v1302_v2 }
 0x1af   :  { %v1307_v38 = vsel %vm1306_vm2, %v1420_v18, %v1303_v5 }
 0x1b0   :  { %v1312_v29 = vsel %vm1309_vm4, %v1311_v63, %v1307_v38 }
 0x1b1   :  { %v1313_v53 = vmul.f32 %v1312_v29, %v1273_v50  ;;  %v1314_v43 = vmul.f32 %v1312_v29, %v1274_v62 }
 0x1b3   :  { %1315 = vst [vmem:[#allocation10] sm:$0xff] %v1313_v53 }
 0x1b4   :  { %1316 = vst [vmem:[#allocation10 + $0x8] sm:$0xff] %v1314_v43 }
 0x1b5   :  { %1329 = dma.vmem_to_hbm [thread:$0]  %s1322_s13, 256, %s1324_s16, [#allocation4], %s1568_s26, %s1568_s26, %s1569_s27  }
 0x1b6   :  { %1565 = dma.done.wait [#allocation4], 256  }
 0x1b7   :  { %1566 = vsyncadd [#allocation4], 4294967040 }
 0x1b8   :  { %1334 = vsyncpa [#allocation3], 1 }
 0x1b9   :  { %1335 = vsyncpa [#allocation6], 1 }
 0x1ba   :  { %1336 = vsyncpa [#allocation9], 1 }
 0x1bb   :  { %1337 = vsyncpa [#allocation4], 1 }

</bundles_post_ra>
